<compile_context>
chip_gen: v6e
topology: v6e:2x2x1
jax: 0.10.0
libtpu: 0.0.40
codegen_flags: <defaults>
</compile_context>

<pallas_src>
import jax
import jax.numpy as jnp
import numpy as np
from jax.experimental import pallas as pl
from jax.experimental.pallas import tpu as pltpu


def _vmem_limit_bytes():
    """Generation-aware VMEM limit: ~3/4 of physical, capped, with a safe fallback."""
    try:
        cap = int(pltpu.get_tpu_info().vmem_capacity_bytes)
    except Exception:
        cap = 64 * 1024 * 1024          # conservative fallback (v7x per-core size)
    return int(max(32 * 1024 * 1024, min(cap * 3 // 4, 100 * 1024 * 1024)))


# ----------------------------------------------------------------------------
# Fused kernel body: one encoder layer + CLS head epilogue for a batch tile
# of TB sequences (TB*S rows).  Weights are full VMEM blocks fetched once.
# ----------------------------------------------------------------------------
def fused_model_kernel(
    x_ref,        # [TB*S, H] bf16  embeddings (batch tile folded into the M dim)
    mask_ref,     # [TB, S]   f32   1.0 = attend, 0.0 = masked
    amt_ref,      # [TB, 1]   f32
    wqkv_ref,     # [H, 3H]   bf16  fused Q/K/V (1/sqrt(H) folded into Q columns)
    wo_ref,       # [H, H]    bf16
    ln1_g_ref, ln1_b_ref,          # [1, H] f32
    w1_ref, b1_ref,                # [H, F] bf16, [1, F] f32
    w2_ref, b2_ref,                # [F, H] bf16, [1, H] f32
    ln2_g_ref, ln2_b_ref,          # [1, H] f32
    hw1a_ref, hw1b_ref, hb1_ref,   # [H,128] bf16, [1,128] f32, [1,128] f32
    hw2_ref, hb2_ref,              # [128,64] bf16, [1,64] f32
    wcs_ref, bcs_ref,              # [64, OUT_PAD] bf16, [1, OUT_PAD] f32
    out_ref,                       # [TB, OUT_PAD] f32 (lane-dense padded logits)
):
    TB, S = mask_ref.shape
    H = x_ref.shape[-1]
    bf16, f32 = jnp.bfloat16, jnp.float32

    x_bf = x_ref[...]                                  # bf16, straight off the DMA
    x = x_bf.astype(f32)                               # residual path stays f32

    # ---- fused QKV projection (attention scale pre-folded into wqkv) ----
    qkv = jnp.dot(x_bf, wqkv_ref[...], preferred_element_type=f32)   # [TB*S, 3H]
    q = qkv[:, :H].reshape(TB, S, H)
    k = qkv[:, H:2 * H].reshape(TB, S, H)
    v = qkv[:, 2 * H:].reshape(TB, S, H)

    # ---- attention, softmax in f32 ----
    # TODO(synk): at real S use flash-style KV tiling and bf16 exp on v6e/v7x.
    scores = jnp.einsum("bqd,bkd->bqk", q.astype(bf16), k.astype(bf16),
                        preferred_element_type=f32)                   # [TB,S,S]
    neg = (mask_ref[...] - 1.0) * 1e9                                 # [TB,S]
    scores = scores + neg[:, None, :]
    m = jnp.max(scores, axis=-1, keepdims=True)
    e = jnp.exp(scores - m)
    denom = jnp.sum(e, axis=-1, keepdims=True)
    p = e * pl.reciprocal(denom, approx=True)                         # EUP recip
    attn = jnp.einsum("bqk,bkd->bqd", p.astype(bf16), v.astype(bf16),
                      preferred_element_type=f32).reshape(TB * S, H)

    # ---- output projection + residual + LayerNorm 1 (f32 elementwise) ----
    h = jnp.dot(attn.astype(bf16), wo_ref[...], preferred_element_type=f32) + x
    mu = jnp.mean(h, axis=-1, keepdims=True)
    var = jnp.mean((h - mu) ** 2, axis=-1, keepdims=True)
    h = (h - mu) * jax.lax.rsqrt(var + 1e-12) * ln1_g_ref[...] + ln1_b_ref[...]

    # ---- FFN + residual + LayerNorm 2 ----
    ff = jnp.dot(h.astype(bf16), w1_ref[...], preferred_element_type=f32) + b1_ref[...]
    ff = jnp.maximum(ff, 0.0)
    ff = jnp.dot(ff.astype(bf16), w2_ref[...], preferred_element_type=f32) + b2_ref[...]
    y = ff + h
    mu2 = jnp.mean(y, axis=-1, keepdims=True)
    var2 = jnp.mean((y - mu2) ** 2, axis=-1, keepdims=True)
    y = (y - mu2) * jax.lax.rsqrt(var2 + 1e-12) * ln2_g_ref[...] + ln2_b_ref[...]

    # ---- CombinedModel head epilogue on the CLS rows only ----
    cls_tok = y.reshape(TB, S, H)[:, 0, :]                            # [TB, H]
    amt = amt_ref[...]                                                # [TB, 1]
    # fc1 over concat(cls, amount) == cls @ W1[:H] + amount * W1[H] + b1
    h1 = jnp.dot(cls_tok.astype(bf16), hw1a_ref[...], preferred_element_type=f32)
    h1 = jnp.maximum(h1 + amt * hw1b_ref[...] + hb1_ref[...], 0.0)    # relu
    h2 = jnp.dot(h1.astype(bf16), hw2_ref[...], preferred_element_type=f32) + hb2_ref[...]
    h2 = jnp.maximum(h2, 0.0)                                         # relu
    # fused (category | subcategory | zero-pad) classifier, lane-dense store
    out_ref[...] = (jnp.dot(h2.astype(bf16), wcs_ref[...],
                            preferred_element_type=f32) + bcs_ref[...])


# ----------------------------------------------------------------------------
# Forward wrapper: embedding gathers in plain JAX, one pallas_call with a
# batch-row grid (parallel) and once-fetched weights.
# ----------------------------------------------------------------------------
def combined_model_forward(params, input_ids, attention_mask, token_type_ids, amount,
                           *, batch_tile=8):
    emb, enc, head = params["emb"], params["enc"], params["head"]
    B, S = input_ids.shape
    H = emb["word"].shape[1]
    F = enc["w1"].shape[1]
    out_pad = head["wcs"].shape[1]

    # TB batch elements (= TB*S MXU rows) per grid step.  TB is a multiple of 8
    # so the mask / amount / output blocks are sublane-dense (unmasked vst).
    # At real BERT sizes pick TB so TB*S is a multiple of 256 (v6e/v7x MXU).
    TB = batch_tile
    n_tiles = pl.cdiv(B, TB)
    B_pad = n_tiles * TB

    x = (emb["word"][input_ids]
         + emb["type"][token_type_ids]
         + emb["pos"][None, :S, :]).astype(jnp.bfloat16)              # bf16 DMA
    mask = attention_mask.astype(jnp.float32)                         # [B,S]
    amt = amount.astype(jnp.float32).reshape(B, 1)

    if B_pad != B:                                                    # pad batch rows
        pad = B_pad - B
        x = jnp.concatenate([x, jnp.zeros((pad, S, H), x.dtype)], axis=0)
        mask = jnp.concatenate([mask, jnp.ones((pad, S), mask.dtype)], axis=0)
        amt = jnp.concatenate([amt, jnp.zeros((pad, 1), amt.dtype)], axis=0)

    x_flat = x.reshape(B_pad * S, H)                                  # batch -> M dim
    rows = TB * S

    weight_args = (enc["wqkv"], enc["wo"], enc["ln1_g"], enc["ln1_b"],
                   enc["w1"], enc["b1"], enc["w2"], enc["b2"],
                   enc["ln2_g"], enc["ln2_b"],
                   head["w1a"], head["w1b"], head["b1"],
                   head["w2"], head["b2"], head["wcs"], head["bcs"])

    # Loop-invariant weights: constant index_map -> fetched into VMEM once,
    # no per-step re-DMA / double-buffer churn.
    def w_spec(a):
        return pl.BlockSpec(a.shape, lambda i: (0, 0))

    in_specs = ([pl.BlockSpec((rows, H), lambda i: (i, 0)),
                 pl.BlockSpec((TB, S), lambda i: (i, 0)),
                 pl.BlockSpec((TB, 1), lambda i: (i, 0))]
                + [w_spec(a) for a in weight_args])
    out_specs = pl.BlockSpec((TB, out_pad), lambda i: (i, 0))

    # Advisory cost hint for XLA scheduling around the custom call.
    M = B_pad * S
    flops = int(2 * M * H * 3 * H          # QKV
                + 4 * B_pad * S * S * H    # scores + attn@V
                + 2 * M * H * H            # output proj
                + 4 * M * H * F            # FFN up + down
                + 2 * B_pad * (H * 128 + 128 * 64 + 64 * out_pad))
    transcendentals = int(B_pad * S * S + B_pad * S + 2 * M)          # exp, recip, rsqrt
    bytes_accessed = int(
        x_flat.size * x_flat.dtype.itemsize + mask.size * 4 + amt.size * 4
        + sum(int(a.size) * a.dtype.itemsize for a in weight_args)
        + B_pad * out_pad * 4)

    logits = pl.pallas_call(
        fused_model_kernel,
        out_shape=jax.ShapeDtypeStruct((B_pad, out_pad), jnp.float32),
        grid_spec=pltpu.PrefetchScalarGridSpec(
            num_scalar_prefetch=0,
            grid=(n_tiles,),
            in_specs=in_specs,
            out_specs=out_specs),
        compiler_params=pltpu.CompilerParams(
            dimension_semantics=("parallel",),
            vmem_limit_bytes=_vmem_limit_bytes()),
        cost_estimate=pl.CostEstimate(flops=flops,
                                      transcendentals=transcendentals,
                                      bytes_accessed=bytes_accessed),
    )(x_flat, mask, amt, *weight_args)

    logits = logits[:B]
    nc, ns = params["n_cat"], params["n_sub"]
    return logits[:, :nc], logits[:, nc:nc + ns]


# ----------------------------------------------------------------------------
# Deterministic parameter construction (weights pre-cast to bf16 on MXU paths,
# attention scale folded into the Q columns of the fused QKV weight)
# ----------------------------------------------------------------------------
def make_params(key, vocab, seq, hidden, ffn, n_cat, n_sub):
    ks = jax.random.split(key, 16)
    s = 0.02
    f32, bf16 = jnp.float32, jnp.bfloat16
    emb = {
        "word": s * jax.random.normal(ks[0], (vocab, hidden), f32),
        "type": s * jax.random.normal(ks[1], (2, hidden), f32),
        "pos":  s * jax.random.normal(ks[2], (seq, hidden), f32),
    }
    wq = s * jax.random.normal(ks[3], (hidden, hidden), f32)
    wq = wq * (1.0 / float(np.sqrt(hidden)))          # fold 1/sqrt(H) attention scale
    wk = s * jax.random.normal(ks[4], (hidden, hidden), f32)
    wv = s * jax.random.normal(ks[5], (hidden, hidden), f32)
    enc = {
        "wqkv": jnp.concatenate([wq, wk, wv], axis=1).astype(bf16),   # fused [H,3H]
        "wo": (s * jax.random.normal(ks[6], (hidden, hidden), f32)).astype(bf16),
        "ln1_g": jnp.ones((1, hidden), f32), "ln1_b": jnp.zeros((1, hidden), f32),
        "w1": (s * jax.random.normal(ks[7], (hidden, ffn), f32)).astype(bf16),
        "b1": jnp.zeros((1, ffn), f32),
        "w2": (s * jax.random.normal(ks[8], (ffn, hidden), f32)).astype(bf16),
        "b2": jnp.zeros((1, hidden), f32),
        "ln2_g": jnp.ones((1, hidden), f32), "ln2_b": jnp.zeros((1, hidden), f32),
    }
    # fc1: Linear(hidden+1, 128), stored transposed, split into [H,128] + [1,128]
    w1_full = s * jax.random.normal(ks[9], (hidden + 1, 128), f32)
    wc = s * jax.random.normal(ks[11], (64, n_cat), f32)
    ws = s * jax.random.normal(ks[12], (64, n_sub), f32)
    out_pad = 128                                   # lane-dense fused classifier
    wcs = (jnp.zeros((64, out_pad), f32)
           .at[:, :n_cat].set(wc)
           .at[:, n_cat:n_cat + n_sub].set(ws))
    head = {
        "w1a": w1_full[:hidden, :].astype(bf16),
        "w1b": w1_full[hidden:hidden + 1, :],       # f32 (elementwise amount path)
        "b1": jnp.zeros((1, 128), f32),
        "w2": (s * jax.random.normal(ks[10], (128, 64), f32)).astype(bf16),
        "b2": jnp.zeros((1, 64), f32),
        "wcs": wcs.astype(bf16),
        "bcs": jnp.zeros((1, out_pad), f32),
    }
    return {"emb": emb, "enc": enc, "head": head, "n_cat": n_cat, "n_sub": n_sub}


# ----------------------------------------------------------------------------
# Plain-JAX reference mirroring the kernel math (same bf16 operand casts,
# scale folded into wqkv, exact softmax)
# ----------------------------------------------------------------------------
def reference_forward(params, input_ids, attention_mask, token_type_ids, amount):
    emb, enc, head = params["emb"], params["enc"], params["head"]
    B, S = input_ids.shape
    H = emb["word"].shape[1]
    f32, bf16 = jnp.float32, jnp.bfloat16

    def mm(a, w):
        return jnp.dot(a.astype(bf16), w, preferred_element_type=f32)

    def ln(z, g, b):
        mu = jnp.mean(z, axis=-1, keepdims=True)
        var = jnp.mean((z - mu) ** 2, axis=-1, keepdims=True)
        return (z - mu) * jax.lax.rsqrt(var + 1e-12) * g + b

    x = (emb["word"][input_ids] + emb["type"][token_type_ids]
         + emb["pos"][None, :S, :]).astype(bf16)          # mirror bf16 embedding input
    xf = x.reshape(B * S, H).astype(f32)

    qkv = mm(xf, enc["wqkv"])
    q = qkv[:, :H].reshape(B, S, H)
    k = qkv[:, H:2 * H].reshape(B, S, H)
    v = qkv[:, 2 * H:].reshape(B, S, H)
    scores = jnp.einsum("bqd,bkd->bqk", q.astype(bf16), k.astype(bf16),
                        preferred_element_type=f32)        # scale folded into wqkv
    mask = attention_mask.astype(f32)
    scores = scores + (mask - 1.0)[:, None, :] * 1e9
    p = jax.nn.softmax(scores, axis=-1)
    attn = jnp.einsum("bqk,bkd->bqd", p.astype(bf16), v.astype(bf16),
                      preferred_element_type=f32).reshape(B * S, H)

    h = ln(mm(attn, enc["wo"]) + xf, enc["ln1_g"], enc["ln1_b"])
    ff = jnp.maximum(mm(h, enc["w1"]) + enc["b1"], 0.0)
    ff = mm(ff, enc["w2"]) + enc["b2"]
    y = ln(ff + h, enc["ln2_g"], enc["ln2_b"])

    cls_tok = y.reshape(B, S, H)[:, 0, :]
    amt = amount.astype(f32).reshape(B, 1)
    h1 = jnp.maximum(mm(cls_tok, head["w1a"]) + amt * head["w1b"] + head["b1"], 0.0)
    h2 = jnp.maximum(mm(h1, head["w2"]) + head["b2"], 0.0)
    logits = mm(h2, head["wcs"]) + head["bcs"]
    nc, ns = params["n_cat"], params["n_sub"]
    return logits[:, :nc], logits[:, nc:nc + ns]


if __name__ == "__main__":
    S, H, FFN, VOCAB = 8, 128, 512, 50   # H lane-dense (128)
    N_CAT, N_SUB = 5, 5

    key = jax.random.PRNGKey(0)
    kp, k1, k2 = jax.random.split(key, 3)
    params = make_params(kp, VOCAB, S, H, FFN, N_CAT, N_SUB)

    # Test both a single-tile grid (B=2 -> grid=(1,)) and a multi-tile grid
    # (B=12 -> padded to 16 -> grid=(2,)) to exercise the batch-row pipeline.
    for B, kk in ((2, k1), (12, k2)):
        ki, ka, km = jax.random.split(kk, 3)
        input_ids = jax.random.randint(ki, (B, S), 0, VOCAB, dtype=jnp.int32)
        token_type_ids = jnp.zeros((B, S), jnp.int32)
        lens = jax.random.randint(km, (B,), 1, S + 1, dtype=jnp.int32)
        attention_mask = (jnp.arange(S)[None, :] < lens[:, None]).astype(jnp.int32)
        amount = jax.random.uniform(ka, (B,), jnp.float32, 0.0, 100.0)

        cat_out, sub_out = combined_model_forward(
            params, input_ids, attention_mask, token_type_ids, amount)
        jax.block_until_ready((cat_out, sub_out))

        cat_ref, sub_ref = reference_forward(
            params, input_ids, attention_mask, token_type_ids, amount)

        assert cat_out.shape == (B, N_CAT) and sub_out.shape == (B, N_SUB)
        assert np.allclose(np.asarray(cat_out), np.asarray(cat_ref), atol=2e-3)
        assert np.allclose(np.asarray(sub_out), np.asarray(sub_ref), atol=2e-3)

    print("KERNEL_OK")
</pallas_src>

<mosaic_0001>
module attributes {stable_mosaic.version = 11 : i64} {
  func.func @fused_model_kernel(%arg0: i32, %arg1: memref<64x128xbf16, #tpu.memory_space<vmem>>, %arg2: memref<8x8xf32, #tpu.memory_space<vmem>>, %arg3: memref<8x1xf32, #tpu.memory_space<vmem>>, %arg4: memref<128x384xbf16, #tpu.memory_space<vmem>>, %arg5: memref<128x128xbf16, #tpu.memory_space<vmem>>, %arg6: memref<1x128xf32, #tpu.memory_space<vmem>>, %arg7: memref<1x128xf32, #tpu.memory_space<vmem>>, %arg8: memref<128x512xbf16, #tpu.memory_space<vmem>>, %arg9: memref<1x512xf32, #tpu.memory_space<vmem>>, %arg10: memref<512x128xbf16, #tpu.memory_space<vmem>>, %arg11: memref<1x128xf32, #tpu.memory_space<vmem>>, %arg12: memref<1x128xf32, #tpu.memory_space<vmem>>, %arg13: memref<1x128xf32, #tpu.memory_space<vmem>>, %arg14: memref<128x128xbf16, #tpu.memory_space<vmem>>, %arg15: memref<1x128xf32, #tpu.memory_space<vmem>>, %arg16: memref<1x128xf32, #tpu.memory_space<vmem>>, %arg17: memref<128x64xbf16, #tpu.memory_space<vmem>>, %arg18: memref<1x64xf32, #tpu.memory_space<vmem>>, %arg19: memref<64x128xbf16, #tpu.memory_space<vmem>>, %arg20: memref<1x128xf32, #tpu.memory_space<vmem>>, %arg21: memref<8x128xf32, #tpu.memory_space<vmem>>) attributes {dimension_semantics = [#tpu.dimension_semantics<parallel>], iteration_bounds = array<i64: 1>, scalar_prefetch = 0 : i64, scratch_operands = 0 : i64, tpu.core_type = #tpu.core_type<tc>, window_params = [{transform_indices = @transform_0, window_bounds = array<i64: 64, 128>}, {transform_indices = @transform_1, window_bounds = array<i64: 8, 8>}, {transform_indices = @transform_2, window_bounds = array<i64: 8, 1>}, {pipeline_mode = #tpu.pipeline_mode<synchronous>, transform_indices = @transform_3, window_bounds = array<i64: 128, 384>}, {pipeline_mode = #tpu.pipeline_mode<synchronous>, transform_indices = @transform_4, window_bounds = array<i64: 128, 128>}, {pipeline_mode = #tpu.pipeline_mode<synchronous>, transform_indices = @transform_5, window_bounds = array<i64: 1, 128>}, {pipeline_mode = #tpu.pipeline_mode<synchronous>, transform_indices = @transform_6, window_bounds = array<i64: 1, 128>}, {pipeline_mode = #tpu.pipeline_mode<synchronous>, transform_indices = @transform_7, window_bounds = array<i64: 128, 512>}, {pipeline_mode = #tpu.pipeline_mode<synchronous>, transform_indices = @transform_8, window_bounds = array<i64: 1, 512>}, {pipeline_mode = #tpu.pipeline_mode<synchronous>, transform_indices = @transform_9, window_bounds = array<i64: 512, 128>}, {pipeline_mode = #tpu.pipeline_mode<synchronous>, transform_indices = @transform_10, window_bounds = array<i64: 1, 128>}, {pipeline_mode = #tpu.pipeline_mode<synchronous>, transform_indices = @transform_11, window_bounds = array<i64: 1, 128>}, {pipeline_mode = #tpu.pipeline_mode<synchronous>, transform_indices = @transform_12, window_bounds = array<i64: 1, 128>}, {pipeline_mode = #tpu.pipeline_mode<synchronous>, transform_indices = @transform_13, window_bounds = array<i64: 128, 128>}, {pipeline_mode = #tpu.pipeline_mode<synchronous>, transform_indices = @transform_14, window_bounds = array<i64: 1, 128>}, {pipeline_mode = #tpu.pipeline_mode<synchronous>, transform_indices = @transform_15, window_bounds = array<i64: 1, 128>}, {pipeline_mode = #tpu.pipeline_mode<synchronous>, transform_indices = @transform_16, window_bounds = array<i64: 128, 64>}, {pipeline_mode = #tpu.pipeline_mode<synchronous>, transform_indices = @transform_17, window_bounds = array<i64: 1, 64>}, {pipeline_mode = #tpu.pipeline_mode<synchronous>, transform_indices = @transform_18, window_bounds = array<i64: 64, 128>}, {pipeline_mode = #tpu.pipeline_mode<synchronous>, transform_indices = @transform_19, window_bounds = array<i64: 1, 128>}, {transform_indices = @transform_20, window_bounds = array<i64: 8, 128>}]} {
    %c0 = arith.constant 0 : index
    %c0_0 = arith.constant 0 : index
    %0 = vector.load %arg1[%c0, %c0_0] : memref<64x128xbf16, #tpu.memory_space<vmem>>, vector<64x128xbf16>
    %1 = arith.extf %0 : vector<64x128xbf16> to vector<64x128xf32>
    %c0_1 = arith.constant 0 : index
    %c0_2 = arith.constant 0 : index
    %2 = vector.load %arg4[%c0_1, %c0_2] : memref<128x384xbf16, #tpu.memory_space<vmem>>, vector<128x384xbf16>
    %cst = arith.constant dense<0.000000e+00> : vector<64x384xf32>
    %3 = tpu.matmul %0, %2, %cst {dimension_numbers = #tpu.dot_dimension_numbers<[1], [0], [0], [1], [0, 0, 1, 1], [], []>} : vector<64x128xbf16>, vector<128x384xbf16>, vector<64x384xf32> -> vector<64x384xf32>
    %4 = vector.extract_strided_slice %3 {offsets = [0, 0], sizes = [64, 128], strides = [1, 1]} : vector<64x384xf32> to vector<64x128xf32>
    %5 = vector.shape_cast %4 : vector<64x128xf32> to vector<8x8x128xf32>
    %6 = vector.extract_strided_slice %3 {offsets = [0, 128], sizes = [64, 128], strides = [1, 1]} : vector<64x384xf32> to vector<64x128xf32>
    %7 = vector.shape_cast %6 : vector<64x128xf32> to vector<8x8x128xf32>
    %8 = vector.extract_strided_slice %3 {offsets = [0, 256], sizes = [64, 128], strides = [1, 1]} : vector<64x384xf32> to vector<64x128xf32>
    %9 = vector.shape_cast %8 : vector<64x128xf32> to vector<8x8x128xf32>
    %10 = arith.truncf %5 : vector<8x8x128xf32> to vector<8x8x128xbf16>
    %11 = arith.truncf %7 : vector<8x8x128xf32> to vector<8x8x128xbf16>
    "tpu.trace_start"() <{level = 10 : i32, message = "bqd,bkd->bqk"}> : () -> ()
    %cst_3 = arith.constant dense<0.000000e+00> : vector<8x8x8xf32>
    %12 = tpu.matmul %10, %11, %cst_3 {dimension_numbers = #tpu.dot_dimension_numbers<[2], [2], [1], [1], [0, 0, 0, 1, 1, 1], [0], [0]>} : vector<8x8x128xbf16>, vector<8x8x128xbf16>, vector<8x8x8xf32> -> vector<8x8x8xf32>
    "tpu.trace_stop"() : () -> ()
    %c0_4 = arith.constant 0 : index
    %c0_5 = arith.constant 0 : index
    %13 = vector.load %arg2[%c0_4, %c0_5] : memref<8x8xf32, #tpu.memory_space<vmem>>, vector<8x8xf32>
    %cst_6 = arith.constant 1.000000e+00 : f32
    %14 = vector.broadcast %cst_6 : f32 to vector<8x8xf32>
    %15 = arith.subf %13, %14 : vector<8x8xf32>
    %cst_7 = arith.constant 1.000000e+09 : f32
    %16 = vector.broadcast %cst_7 : f32 to vector<8x8xf32>
    %17 = arith.mulf %15, %16 : vector<8x8xf32>
    %18 = vector.shape_cast %17 : vector<8x8xf32> to vector<8x1x8xf32>
    %19 = vector.broadcast %18 : vector<8x1x8xf32> to vector<8x8x8xf32>
    %20 = arith.addf %12, %19 : vector<8x8x8xf32>
    %cst_8 = arith.constant dense<0xFF800000> : vector<8x8xf32>
    %21 = vector.multi_reduction <maximumf>, %20, %cst_8 [2] : vector<8x8x8xf32> to vector<8x8xf32>
    %22 = vector.shape_cast %21 : vector<8x8xf32> to vector<8x8x1xf32>
    %23 = vector.broadcast %22 : vector<8x8x1xf32> to vector<8x8x8xf32>
    %24 = arith.subf %20, %23 : vector<8x8x8xf32>
    %25 = math.exp %24 : vector<8x8x8xf32>
    %cst_9 = arith.constant dense<0.000000e+00> : vector<8x8xf32>
    %26 = vector.multi_reduction <add>, %25, %cst_9 [2] : vector<8x8x8xf32> to vector<8x8xf32>
    %27 = vector.shape_cast %26 : vector<8x8xf32> to vector<8x8x1xf32>
    %28 = tpu.reciprocal %27 {approx = true} : vector<8x8x1xf32> -> vector<8x8x1xf32>
    %29 = vector.broadcast %28 : vector<8x8x1xf32> to vector<8x8x8xf32>
    %30 = arith.mulf %25, %29 : vector<8x8x8xf32>
    %31 = arith.truncf %30 : vector<8x8x8xf32> to vector<8x8x8xbf16>
    %32 = arith.truncf %9 : vector<8x8x128xf32> to vector<8x8x128xbf16>
    "tpu.trace_start"() <{level = 10 : i32, message = "bqk,bkd->bqd"}> : () -> ()
    %cst_10 = arith.constant dense<0.000000e+00> : vector<8x8x128xf32>
    %33 = tpu.matmul %31, %32, %cst_10 {dimension_numbers = #tpu.dot_dimension_numbers<[2], [1], [1], [2], [0, 0, 0, 1, 1, 2], [0], [0]>} : vector<8x8x8xbf16>, vector<8x8x128xbf16>, vector<8x8x128xf32> -> vector<8x8x128xf32>
    "tpu.trace_stop"() : () -> ()
    %34 = vector.shape_cast %33 : vector<8x8x128xf32> to vector<64x128xf32>
    %35 = arith.truncf %34 : vector<64x128xf32> to vector<64x128xbf16>
    %c0_11 = arith.constant 0 : index
    %c0_12 = arith.constant 0 : index
    %36 = vector.load %arg5[%c0_11, %c0_12] : memref<128x128xbf16, #tpu.memory_space<vmem>>, vector<128x128xbf16>
    %cst_13 = arith.constant dense<0.000000e+00> : vector<64x128xf32>
    %37 = tpu.matmul %35, %36, %cst_13 {dimension_numbers = #tpu.dot_dimension_numbers<[1], [0], [0], [1], [0, 0, 1, 1], [], []>} : vector<64x128xbf16>, vector<128x128xbf16>, vector<64x128xf32> -> vector<64x128xf32>
    %38 = arith.addf %37, %1 : vector<64x128xf32>
    %cst_14 = arith.constant dense<0.000000e+00> : vector<64xf32>
    %39 = vector.multi_reduction <add>, %38, %cst_14 [1] : vector<64x128xf32> to vector<64xf32>
    %40 = vector.shape_cast %39 : vector<64xf32> to vector<64x1xf32>
    %cst_15 = arith.constant 1.280000e+02 : f32
    %41 = vector.broadcast %cst_15 : f32 to vector<64x1xf32>
    %42 = arith.divf %40, %41 : vector<64x1xf32>
    %43 = vector.broadcast %42 : vector<64x1xf32> to vector<64x128xf32>
    %44 = arith.subf %38, %43 : vector<64x128xf32>
    %45 = arith.mulf %44, %44 : vector<64x128xf32>
    %cst_16 = arith.constant dense<0.000000e+00> : vector<64xf32>
    %46 = vector.multi_reduction <add>, %45, %cst_16 [1] : vector<64x128xf32> to vector<64xf32>
    %47 = vector.shape_cast %46 : vector<64xf32> to vector<64x1xf32>
    %cst_17 = arith.constant 1.280000e+02 : f32
    %48 = vector.broadcast %cst_17 : f32 to vector<64x1xf32>
    %49 = arith.divf %47, %48 : vector<64x1xf32>
    %50 = vector.broadcast %42 : vector<64x1xf32> to vector<64x128xf32>
    %51 = arith.subf %38, %50 : vector<64x128xf32>
    %cst_18 = arith.constant 9.99999996E-13 : f32
    %52 = vector.broadcast %cst_18 : f32 to vector<64x1xf32>
    %53 = arith.addf %49, %52 : vector<64x1xf32>
    %54 = math.rsqrt %53 : vector<64x1xf32>
    %55 = vector.broadcast %54 : vector<64x1xf32> to vector<64x128xf32>
    %56 = arith.mulf %51, %55 : vector<64x128xf32>
    %c0_19 = arith.constant 0 : index
    %c0_20 = arith.constant 0 : index
    %57 = vector.load %arg6[%c0_19, %c0_20] : memref<1x128xf32, #tpu.memory_space<vmem>>, vector<1x128xf32>
    %58 = vector.broadcast %57 : vector<1x128xf32> to vector<64x128xf32>
    %59 = arith.mulf %56, %58 : vector<64x128xf32>
    %c0_21 = arith.constant 0 : index
    %c0_22 = arith.constant 0 : index
    %60 = vector.load %arg7[%c0_21, %c0_22] : memref<1x128xf32, #tpu.memory_space<vmem>>, vector<1x128xf32>
    %61 = vector.broadcast %60 : vector<1x128xf32> to vector<64x128xf32>
    %62 = arith.addf %59, %61 : vector<64x128xf32>
    %63 = arith.truncf %62 : vector<64x128xf32> to vector<64x128xbf16>
    %c0_23 = arith.constant 0 : index
    %c0_24 = arith.constant 0 : index
    %64 = vector.load %arg8[%c0_23, %c0_24] : memref<128x512xbf16, #tpu.memory_space<vmem>>, vector<128x512xbf16>
    %cst_25 = arith.constant dense<0.000000e+00> : vector<64x512xf32>
    %65 = tpu.matmul %63, %64, %cst_25 {dimension_numbers = #tpu.dot_dimension_numbers<[1], [0], [0], [1], [0, 0, 1, 1], [], []>} : vector<64x128xbf16>, vector<128x512xbf16>, vector<64x512xf32> -> vector<64x512xf32>
    %c0_26 = arith.constant 0 : index
    %c0_27 = arith.constant 0 : index
    %66 = vector.load %arg9[%c0_26, %c0_27] : memref<1x512xf32, #tpu.memory_space<vmem>>, vector<1x512xf32>
    %67 = vector.broadcast %66 : vector<1x512xf32> to vector<64x512xf32>
    %68 = arith.addf %65, %67 : vector<64x512xf32>
    %cst_28 = arith.constant 0.000000e+00 : f32
    %69 = vector.broadcast %cst_28 : f32 to vector<64x512xf32>
    %70 = arith.maximumf %68, %69 : vector<64x512xf32>
    %71 = arith.truncf %70 : vector<64x512xf32> to vector<64x512xbf16>
    %c0_29 = arith.constant 0 : index
    %c0_30 = arith.constant 0 : index
    %72 = vector.load %arg10[%c0_29, %c0_30] : memref<512x128xbf16, #tpu.memory_space<vmem>>, vector<512x128xbf16>
    %cst_31 = arith.constant dense<0.000000e+00> : vector<64x128xf32>
    %73 = tpu.matmul %71, %72, %cst_31 {dimension_numbers = #tpu.dot_dimension_numbers<[1], [0], [0], [1], [0, 0, 1, 1], [], []>} : vector<64x512xbf16>, vector<512x128xbf16>, vector<64x128xf32> -> vector<64x128xf32>
    %c0_32 = arith.constant 0 : index
    %c0_33 = arith.constant 0 : index
    %74 = vector.load %arg11[%c0_32, %c0_33] : memref<1x128xf32, #tpu.memory_space<vmem>>, vector<1x128xf32>
    %75 = vector.broadcast %74 : vector<1x128xf32> to vector<64x128xf32>
    %76 = arith.addf %73, %75 : vector<64x128xf32>
    %77 = arith.addf %76, %62 : vector<64x128xf32>
    %cst_34 = arith.constant dense<0.000000e+00> : vector<64xf32>
    %78 = vector.multi_reduction <add>, %77, %cst_34 [1] : vector<64x128xf32> to vector<64xf32>
    %79 = vector.shape_cast %78 : vector<64xf32> to vector<64x1xf32>
    %cst_35 = arith.constant 1.280000e+02 : f32
    %80 = vector.broadcast %cst_35 : f32 to vector<64x1xf32>
    %81 = arith.divf %79, %80 : vector<64x1xf32>
    %82 = vector.broadcast %81 : vector<64x1xf32> to vector<64x128xf32>
    %83 = arith.subf %77, %82 : vector<64x128xf32>
    %84 = arith.mulf %83, %83 : vector<64x128xf32>
    %cst_36 = arith.constant dense<0.000000e+00> : vector<64xf32>
    %85 = vector.multi_reduction <add>, %84, %cst_36 [1] : vector<64x128xf32> to vector<64xf32>
    %86 = vector.shape_cast %85 : vector<64xf32> to vector<64x1xf32>
    %cst_37 = arith.constant 1.280000e+02 : f32
    %87 = vector.broadcast %cst_37 : f32 to vector<64x1xf32>
    %88 = arith.divf %86, %87 : vector<64x1xf32>
    %89 = vector.broadcast %81 : vector<64x1xf32> to vector<64x128xf32>
    %90 = arith.subf %77, %89 : vector<64x128xf32>
    %cst_38 = arith.constant 9.99999996E-13 : f32
    %91 = vector.broadcast %cst_38 : f32 to vector<64x1xf32>
    %92 = arith.addf %88, %91 : vector<64x1xf32>
    %93 = math.rsqrt %92 : vector<64x1xf32>
    %94 = vector.broadcast %93 : vector<64x1xf32> to vector<64x128xf32>
    %95 = arith.mulf %90, %94 : vector<64x128xf32>
    %c0_39 = arith.constant 0 : index
    %c0_40 = arith.constant 0 : index
    %96 = vector.load %arg12[%c0_39, %c0_40] : memref<1x128xf32, #tpu.memory_space<vmem>>, vector<1x128xf32>
    %97 = vector.broadcast %96 : vector<1x128xf32> to vector<64x128xf32>
    %98 = arith.mulf %95, %97 : vector<64x128xf32>
    %c0_41 = arith.constant 0 : index
    %c0_42 = arith.constant 0 : index
    %99 = vector.load %arg13[%c0_41, %c0_42] : memref<1x128xf32, #tpu.memory_space<vmem>>, vector<1x128xf32>
    %100 = vector.broadcast %99 : vector<1x128xf32> to vector<64x128xf32>
    %101 = arith.addf %98, %100 : vector<64x128xf32>
    %102 = vector.shape_cast %101 : vector<64x128xf32> to vector<8x8x128xf32>
    %103 = vector.extract_strided_slice %102 {offsets = [0, 0, 0], sizes = [8, 1, 128], strides = [1, 1, 1]} : vector<8x8x128xf32> to vector<8x1x128xf32>
    %104 = vector.shape_cast %103 : vector<8x1x128xf32> to vector<8x128xf32>
    %c0_43 = arith.constant 0 : index
    %c0_44 = arith.constant 0 : index
    %105 = vector.load %arg3[%c0_43, %c0_44] : memref<8x1xf32, #tpu.memory_space<vmem>>, vector<8x1xf32>
    %106 = arith.truncf %104 : vector<8x128xf32> to vector<8x128xbf16>
    %c0_45 = arith.constant 0 : index
    %c0_46 = arith.constant 0 : index
    %107 = vector.load %arg14[%c0_45, %c0_46] : memref<128x128xbf16, #tpu.memory_space<vmem>>, vector<128x128xbf16>
    %cst_47 = arith.constant dense<0.000000e+00> : vector<8x128xf32>
    %108 = tpu.matmul %106, %107, %cst_47 {dimension_numbers = #tpu.dot_dimension_numbers<[1], [0], [0], [1], [0, 0, 1, 1], [], []>} : vector<8x128xbf16>, vector<128x128xbf16>, vector<8x128xf32> -> vector<8x128xf32>
    %c0_48 = arith.constant 0 : index
    %c0_49 = arith.constant 0 : index
    %109 = vector.load %arg15[%c0_48, %c0_49] : memref<1x128xf32, #tpu.memory_space<vmem>>, vector<1x128xf32>
    %110 = vector.broadcast %105 : vector<8x1xf32> to vector<8x128xf32>
    %111 = vector.broadcast %109 : vector<1x128xf32> to vector<8x128xf32>
    %112 = arith.mulf %110, %111 : vector<8x128xf32>
    %113 = arith.addf %108, %112 : vector<8x128xf32>
    %c0_50 = arith.constant 0 : index
    %c0_51 = arith.constant 0 : index
    %114 = vector.load %arg16[%c0_50, %c0_51] : memref<1x128xf32, #tpu.memory_space<vmem>>, vector<1x128xf32>
    %115 = vector.broadcast %114 : vector<1x128xf32> to vector<8x128xf32>
    %116 = arith.addf %113, %115 : vector<8x128xf32>
    %cst_52 = arith.constant 0.000000e+00 : f32
    %117 = vector.broadcast %cst_52 : f32 to vector<8x128xf32>
    %118 = arith.maximumf %116, %117 : vector<8x128xf32>
    %119 = arith.truncf %118 : vector<8x128xf32> to vector<8x128xbf16>
    %c0_53 = arith.constant 0 : index
    %c0_54 = arith.constant 0 : index
    %120 = vector.load %arg17[%c0_53, %c0_54] : memref<128x64xbf16, #tpu.memory_space<vmem>>, vector<128x64xbf16>
    %cst_55 = arith.constant dense<0.000000e+00> : vector<8x64xf32>
    %121 = tpu.matmul %119, %120, %cst_55 {dimension_numbers = #tpu.dot_dimension_numbers<[1], [0], [0], [1], [0, 0, 1, 1], [], []>} : vector<8x128xbf16>, vector<128x64xbf16>, vector<8x64xf32> -> vector<8x64xf32>
    %c0_56 = arith.constant 0 : index
    %c0_57 = arith.constant 0 : index
    %122 = vector.load %arg18[%c0_56, %c0_57] : memref<1x64xf32, #tpu.memory_space<vmem>>, vector<1x64xf32>
    %123 = vector.broadcast %122 : vector<1x64xf32> to vector<8x64xf32>
    %124 = arith.addf %121, %123 : vector<8x64xf32>
    %cst_58 = arith.constant 0.000000e+00 : f32
    %125 = vector.broadcast %cst_58 : f32 to vector<8x64xf32>
    %126 = arith.maximumf %124, %125 : vector<8x64xf32>
    %127 = arith.truncf %126 : vector<8x64xf32> to vector<8x64xbf16>
    %c0_59 = arith.constant 0 : index
    %c0_60 = arith.constant 0 : index
    %128 = vector.load %arg19[%c0_59, %c0_60] : memref<64x128xbf16, #tpu.memory_space<vmem>>, vector<64x128xbf16>
    %cst_61 = arith.constant dense<0.000000e+00> : vector<8x128xf32>
    %129 = tpu.matmul %127, %128, %cst_61 {dimension_numbers = #tpu.dot_dimension_numbers<[1], [0], [0], [1], [0, 0, 1, 1], [], []>} : vector<8x64xbf16>, vector<64x128xbf16>, vector<8x128xf32> -> vector<8x128xf32>
    %c0_62 = arith.constant 0 : index
    %c0_63 = arith.constant 0 : index
    %130 = vector.load %arg20[%c0_62, %c0_63] : memref<1x128xf32, #tpu.memory_space<vmem>>, vector<1x128xf32>
    %131 = vector.broadcast %130 : vector<1x128xf32> to vector<8x128xf32>
    %132 = arith.addf %129, %131 : vector<8x128xf32>
    %c0_64 = arith.constant 0 : index
    %c0_65 = arith.constant 0 : index
    %133 = vector.load %arg21[%c0_64, %c0_65] : memref<8x128xf32, #tpu.memory_space<vmem>>, vector<8x128xf32>
    tpu.vector_store %arg21[%c0_64, %c0_65], %132 {strides = array<i32>} : memref<8x128xf32, #tpu.memory_space<vmem>>, vector<8x128xf32>,
    return
  }
  func.func @transform_0(%arg0: i32) -> (i32, i32) {
    %c0_i32 = arith.constant 0 : i32
    %c0_i32_0 = arith.constant 0 : i32
    return %arg0, %c0_i32 : i32, i32
  }
  func.func @transform_1(%arg0: i32) -> (i32, i32) {
    %c0_i32 = arith.constant 0 : i32
    %c0_i32_0 = arith.constant 0 : i32
    return %arg0, %c0_i32 : i32, i32
  }
  func.func @transform_2(%arg0: i32) -> (i32, i32) {
    %c0_i32 = arith.constant 0 : i32
    %c0_i32_0 = arith.constant 0 : i32
    return %arg0, %c0_i32 : i32, i32
  }
  func.func @transform_3(%arg0: i32) -> (i32, i32) {
    %c0_i32 = arith.constant 0 : i32
    %c0_i32_0 = arith.constant 0 : i32
    %c0_i32_1 = arith.constant 0 : i32
    return %c0_i32, %c0_i32_0 : i32, i32
  }
  func.func @transform_4(%arg0: i32) -> (i32, i32) {
    %c0_i32 = arith.constant 0 : i32
    %c0_i32_0 = arith.constant 0 : i32
    %c0_i32_1 = arith.constant 0 : i32
    return %c0_i32, %c0_i32_0 : i32, i32
  }
  func.func @transform_5(%arg0: i32) -> (i32, i32) {
    %c0_i32 = arith.constant 0 : i32
    %c0_i32_0 = arith.constant 0 : i32
    %c0_i32_1 = arith.constant 0 : i32
    return %c0_i32, %c0_i32_0 : i32, i32
  }
  func.func @transform_6(%arg0: i32) -> (i32, i32) {
    %c0_i32 = arith.constant 0 : i32
    %c0_i32_0 = arith.constant 0 : i32
    %c0_i32_1 = arith.constant 0 : i32
    return %c0_i32, %c0_i32_0 : i32, i32
  }
  func.func @transform_7(%arg0: i32) -> (i32, i32) {
    %c0_i32 = arith.constant 0 : i32
    %c0_i32_0 = arith.constant 0 : i32
    %c0_i32_1 = arith.constant 0 : i32
    return %c0_i32, %c0_i32_0 : i32, i32
  }
  func.func @transform_8(%arg0: i32) -> (i32, i32) {
    %c0_i32 = arith.constant 0 : i32
    %c0_i32_0 = arith.constant 0 : i32
    %c0_i32_1 = arith.constant 0 : i32
    return %c0_i32, %c0_i32_0 : i32, i32
  }
  func.func @transform_9(%arg0: i32) -> (i32, i32) {
    %c0_i32 = arith.constant 0 : i32
    %c0_i32_0 = arith.constant 0 : i32
    %c0_i32_1 = arith.constant 0 : i32
    return %c0_i32, %c0_i32_0 : i32, i32
  }
  func.func @transform_10(%arg0: i32) -> (i32, i32) {
    %c0_i32 = arith.constant 0 : i32
    %c0_i32_0 = arith.constant 0 : i32
    %c0_i32_1 = arith.constant 0 : i32
    return %c0_i32, %c0_i32_0 : i32, i32
  }
  func.func @transform_11(%arg0: i32) -> (i32, i32) {
    %c0_i32 = arith.constant 0 : i32
    %c0_i32_0 = arith.constant 0 : i32
    %c0_i32_1 = arith.constant 0 : i32
    return %c0_i32, %c0_i32_0 : i32, i32
  }
  func.func @transform_12(%arg0: i32) -> (i32, i32) {
    %c0_i32 = arith.constant 0 : i32
    %c0_i32_0 = arith.constant 0 : i32
    %c0_i32_1 = arith.constant 0 : i32
    return %c0_i32, %c0_i32_0 : i32, i32
  }
  func.func @transform_13(%arg0: i32) -> (i32, i32) {
    %c0_i32 = arith.constant 0 : i32
    %c0_i32_0 = arith.constant 0 : i32
    %c0_i32_1 = arith.constant 0 : i32
    return %c0_i32, %c0_i32_0 : i32, i32
  }
  func.func @transform_14(%arg0: i32) -> (i32, i32) {
    %c0_i32 = arith.constant 0 : i32
    %c0_i32_0 = arith.constant 0 : i32
    %c0_i32_1 = arith.constant 0 : i32
    return %c0_i32, %c0_i32_0 : i32, i32
  }
  func.func @transform_15(%arg0: i32) -> (i32, i32) {
    %c0_i32 = arith.constant 0 : i32
    %c0_i32_0 = arith.constant 0 : i32
    %c0_i32_1 = arith.constant 0 : i32
    return %c0_i32, %c0_i32_0 : i32, i32
  }
  func.func @transform_16(%arg0: i32) -> (i32, i32) {
    %c0_i32 = arith.constant 0 : i32
    %c0_i32_0 = arith.constant 0 : i32
    %c0_i32_1 = arith.constant 0 : i32
    return %c0_i32, %c0_i32_0 : i32, i32
  }
  func.func @transform_17(%arg0: i32) -> (i32, i32) {
    %c0_i32 = arith.constant 0 : i32
    %c0_i32_0 = arith.constant 0 : i32
    %c0_i32_1 = arith.constant 0 : i32
    return %c0_i32, %c0_i32_0 : i32, i32
  }
  func.func @transform_18(%arg0: i32) -> (i32, i32) {
    %c0_i32 = arith.constant 0 : i32
    %c0_i32_0 = arith.constant 0 : i32
    %c0_i32_1 = arith.constant 0 : i32
    return %c0_i32, %c0_i32_0 : i32, i32
  }
  func.func @transform_19(%arg0: i32) -> (i32, i32) {
    %c0_i32 = arith.constant 0 : i32
    %c0_i32_0 = arith.constant 0 : i32
    %c0_i32_1 = arith.constant 0 : i32
    return %c0_i32, %c0_i32_0 : i32, i32
  }
  func.func @transform_20(%arg0: i32) -> (i32, i32) {
    %c0_i32 = arith.constant 0 : i32
    %c0_i32_0 = arith.constant 0 : i32
    return %arg0, %c0_i32 : i32, i32
  }
}

</mosaic_0001>

<bundles_post_ra>
// kernel: tpu_custom_call.1
= control target key start
LH: loop header
LB: loop body
LE: loop exit
PB: predicated region body
PF: predicated region fallthrough
CT: control target
= control target key end

     0   :  { %s4687_s0 = inlined_call_operand.hbm [shape: bf16[64,128], index: 0, kind: input, shape index: {}]   ;;  %s4688_s1 = inlined_call_operand.hbm [shape: f32[8,8], index: 1, kind: input, shape index: {}]   ;;  %s4689_s2 = inlined_call_operand.vmem [shape: f32[8,1], index: 2, kind: input, shape index: {}]   ;;  %s4690_s3 = inlined_call_operand.hbm [shape: bf16[128,384], index: 3, kind: input, shape index: {}]   ;;  %s4691_s4 = inlined_call_operand.vmem [shape: bf16[128,128], index: 4, kind: input, shape index: {}]   ;;  %s4692_s5 = inlined_call_operand.hbm [shape: f32[1,128], index: 5, kind: input, shape index: {}]   ;;  %s4693_s6 = inlined_call_operand.hbm [shape: f32[1,128], index: 6, kind: input, shape index: {}]   ;;  %s4694_s7 = inlined_call_operand.hbm [shape: bf16[128,512], index: 7, kind: input, shape index: {}]   ;;  %s4695_s8 = inlined_call_operand.hbm [shape: f32[1,512], index: 8, kind: input, shape index: {}]   ;;  %s4696_s9 = inlined_call_operand.hbm [shape: bf16[512,128], index: 9, kind: input, shape index: {}]   ;;  %s4697_s10 = inlined_call_operand.hbm [shape: f32[1,128], index: 10, kind: input, shape index: {}]   ;;  %s4698_s11 = inlined_call_operand.hbm [shape: f32[1,128], index: 11, kind: input, shape index: {}]   ;;  %s4699_s12 = inlined_call_operand.hbm [shape: f32[1,128], index: 12, kind: input, shape index: {}]   ;;  %s4700_s13 = inlined_call_operand.vmem [shape: bf16[128,128], index: 13, kind: input, shape index: {}]   ;;  %s4701_s14 = inlined_call_operand.vmem [shape: f32[1,128], index: 14, kind: input, shape index: {}]   ;;  %s4702_s15 = inlined_call_operand.vmem [shape: f32[1,128], index: 15, kind: input, shape index: {}]   ;;  %s4703_s16 = inlined_call_operand.vmem [shape: bf16[128,64], index: 16, kind: input, shape index: {}]   ;;  %s4704_s17 = inlined_call_operand.vmem [shape: f32[1,64], index: 17, kind: input, shape index: {}]   ;;  %s4705_s18 = inlined_call_operand.hbm [shape: bf16[64,128], index: 18, kind: input, shape index: {}]   ;;  %s4706_s19 = inlined_call_operand.vmem [shape: f32[1,128], index: 19, kind: input, shape index: {}]   ;;  %s4707_s20 = inlined_call_operand.hbm [shape: f32[8,128], index: 20, kind: output, shape index: {}]  }
   0x1   :  { %4709 = sst [smem:[#allocation31_spill]] %s4687_s0 }
   0x2   :  { %4710 = sst [smem:[#allocation32_spill]] %s4688_s1 }
   0x3   :  { %4711 = sst [smem:[#allocation33_spill]] %s4689_s2 }
   0x4   :  { %4712 = sst [smem:[#allocation34_spill]] %s4690_s3 }
   0x5   :  { %4713 = sst [smem:[#allocation35_spill]] %s4691_s4 }
   0x6   :  { %25 = vsyncpa [#allocation3], 0 }
   0x7   :  { %26 = vsyncpa [#allocation6], 0 }
   0x8   :  { %27 = vsyncpa [#allocation9], 0 }
   0x9   :  { %28 = vsyncpa [#allocation12], 0 }
   0xa   :  { %29 = vsyncpa [#allocation15], 0 }
   0xb   :  { %30 = vsyncpa [#allocation18], 0 }
   0xc   :  { %31 = vsyncpa [#allocation21], 0 }
   0xd   :  { %32 = vsyncpa [#allocation4], 0  ;;  %s4041_s1 = smov [#allocation5]   ;;  %s4042_s23 = smov [#allocation8]  }
   0xe   :  { %s51_s22 = sshll.u32 %s4041_s1, 4  ;;  %s77_s24 = sshll.u32 %s4042_s23, 4  ;;  %s52_s22 = int_to_ptr.vmem [resolvable:$true] %s51_s22  ;;  %s78_s24 = int_to_ptr.vmem [resolvable:$true] %s77_s24 }
   0xf   :  { %s3773_s2 = scalar_lea.vmem %s52_s22, 128  ;;  %p3778_p1 = scmp.lt.s32.totalorder %s52_s22, %s52_s22 }
  0x10   :  { %p3774_p0 = scmp.ne.s32.totalorder %s52_s22, %s3773_s2  ;;  %p3779_p2 = scmp.lt.s32.totalorder %s3773_s2, %s3773_s2 }
  0x12   :  { %p3780_p3 = por %p3779_p2, %p3778_p1 }
  0x14   :  { %p3781_p4 = pnand %p3780_p3, %p3774_p0 }
  0x16   :  { %3784 = shalt.err (!%p3781_p4)
}
  0x17   :  { %s4714_s26 = sld [smem:[#allocation32_spill]]  ;;  %s3793_s27 = scalar_lea.vmem %s78_s24, 16 }
  0x18   :  { %p3794_p5 = scmp.ne.s32.totalorder %s78_s24, %s3793_s27  ;;  %s3797_s28 = scalar_lea.vmem %s78_s24, 32 }
  0x19   :  { %p3798_p6 = scmp.lt.s32.totalorder %s78_s24, %s78_s24  ;;  %p3799_p7 = scmp.lt.s32.totalorder %s3797_s28, %s3793_s27 }
  0x1b   :  { %p3800_p8 = por %p3799_p7, %p3798_p6 }
  0x1d   :  { %54 = dma.hbm_to_vmem [thread:$0]  %s4714_s26, 128, %s52_s22, [#allocation6]  }
  0x1e   :  { %p3801_p9 = pnand %p3800_p8, %p3794_p5 }
  0x20   :  { %3804 = shalt.err (!%p3801_p9)
}
  0x21   :  { %80 = dma.hbm_to_vmem [thread:$0]  %s4692_s5, 16, %s78_s24, [#allocation9]  }
  0x22   :  { %s4043_s30 = smov [#allocation11]  }
  0x23   :  { %s96_s0 = sshll.u32 %s4043_s30, 4  ;;  %s97_s0 = int_to_ptr.vmem [resolvable:$true] %s96_s0 }
  0x24   :  { %s3813_s21 = scalar_lea.vmem %s97_s0, 4096  ;;  %p3818_p11 = scmp.lt.s32.totalorder %s97_s0, %s97_s0 }
  0x25   :  { %p3814_p10 = scmp.ne.s32.totalorder %s97_s0, %s3813_s21  ;;  %p3819_p12 = scmp.lt.s32.totalorder %s3813_s21, %s3813_s21 }
  0x27   :  { %p3820_p13 = por %p3819_p12, %p3818_p11 }
  0x29   :  { %p3821_p0 = pnand %p3820_p13, %p3814_p10 }
  0x2b   :  { %3824 = shalt.err (!%p3821_p0)
}
  0x2c   :  { %s4044_s1 = smov 256   ;;  %s4045_s22 = smov 16  }
  0x2d   :  { %102 = dma.hbm_to_vmem [thread:$0]  %s4694_s7, 4096, %s97_s0, [#allocation12], %s4044_s1, %s4044_s1, %s4045_s22  }
  0x2e   :  { %s4046_s25 = smov [#allocation14]   ;;  %s4047_s5 = smov [#allocation17]  }
  0x2f   :  { %s118_s3 = sshll.u32 %s4046_s25, 4  ;;  %s141_s24 = sshll.u32 %s4047_s5, 4  ;;  %s119_s3 = int_to_ptr.vmem [resolvable:$true] %s118_s3  ;;  %s142_s24 = int_to_ptr.vmem [resolvable:$true] %s141_s24 }
  0x30   :  { %s3833_s26 = scalar_lea.vmem %s119_s3, 4096  ;;  %p3838_p2 = scmp.lt.s32.totalorder %s119_s3, %s119_s3 }
  0x31   :  { %p3834_p1 = scmp.ne.s32.totalorder %s119_s3, %s3833_s26  ;;  %p3839_p3 = scmp.lt.s32.totalorder %s3833_s26, %s3833_s26 }
  0x33   :  { %p3840_p4 = por %p3839_p3, %p3838_p2 }
  0x35   :  { %p3841_p5 = pnand %p3840_p4, %p3834_p1 }
  0x37   :  { %3844 = shalt.err (!%p3841_p5)
}
  0x38   :  { %s4048_s27 = smov 64   ;;  %s4049_s28 = smov 4  }
  0x39   :  { %124 = dma.hbm_to_vmem [thread:$0]  %s4696_s9, 4096, %s119_s3, [#allocation15], %s4048_s27, %s4048_s27, %s4049_s28  }
  0x3a   :  { %s3853_s7 = scalar_lea.vmem %s142_s24, 16  ;;  %s3857_s30 = scalar_lea.vmem %s142_s24, 32 }
  0x3b   :  { %p3854_p6 = scmp.ne.s32.totalorder %s142_s24, %s3853_s7  ;;  %p3858_p7 = scmp.lt.s32.totalorder %s142_s24, %s142_s24 }
  0x3c   :  { %p3859_p8 = scmp.lt.s32.totalorder %s3857_s30, %s3853_s7 }
  0x3e   :  { %p3860_p9 = por %p3859_p8, %p3858_p7 }
  0x40   :  { %p3861_p10 = pnand %p3860_p9, %p3854_p6 }
  0x42   :  { %3864 = shalt.err (!%p3861_p10)
}
  0x43   :  { %144 = dma.hbm_to_vmem [thread:$0]  %s4698_s11, 16, %s142_s24, [#allocation18]  }
  0x44   :  { %s4050_s1 = smov [#allocation2]   ;;  %s4051_s23 = smov [#allocation7]  }
  0x45   :  { %s38_s22 = sshll.u32 %s4050_s1, 4  ;;  %s62_s2 = sshll.u32 %s4051_s23, 4  ;;  %s39_s22 = int_to_ptr.vmem [resolvable:$true] %s38_s22  ;;  %s63_s2 = int_to_ptr.vmem [resolvable:$true] %s62_s2 }
  0x46   :  { %s3873_s25 = scalar_lea.vmem %s39_s22, 512  ;;  %p3878_p12 = scmp.lt.s32.totalorder %s39_s22, %s39_s22 }
  0x47   :  { %p3874_p11 = scmp.ne.s32.totalorder %s39_s22, %s3873_s25  ;;  %p3879_p13 = scmp.lt.s32.totalorder %s3873_s25, %s3873_s25 }
  0x49   :  { %p3880_p0 = por %p3879_p13, %p3878_p12 }
  0x4b   :  { %p3881_p1 = pnand %p3880_p0, %p3874_p11 }
  0x4d   :  { %3884 = shalt.err (!%p3881_p1)
}
  0x4e   :  { %s4715_s5 = sld [smem:[#allocation31_spill]]  ;;  %s3893_s11 = scalar_lea.vmem %s63_s2, 3072 }
  0x4f   :  { %p3894_p2 = scmp.ne.s32.totalorder %s63_s2, %s3893_s11  ;;  %p3898_p3 = scmp.lt.s32.totalorder %s63_s2, %s63_s2 }
  0x50   :  { %p3899_p4 = scmp.lt.s32.totalorder %s3893_s11, %s3893_s11 }
  0x52   :  { %p3900_p5 = por %p3899_p4, %p3898_p3 }
  0x54   :  { %44 = dma.hbm_to_vmem [thread:$0]  %s4715_s5, 512, %s39_s22, [#allocation3], %s4048_s27, %s4048_s27, %s4049_s28  }
  0x55   :  { %p3901_p6 = pnand %p3900_p5, %p3894_p2 }
  0x57   :  { %3904 = shalt.err (!%p3901_p6)
}
  0x58   :  { %s4052_s24 = smov 192   ;;  %s4053_s26 = smov 12  }
  0x59   :  { %s4716_s7 = sld [smem:[#allocation34_spill]]  ;;  %s4054_s30 = smov [#allocation10]  }
  0x5a   :  { %s87_s0 = sshll.u32 %s4054_s30, 4  ;;  %s4055_s21 = smov [#allocation13]   ;;  %s88_s0 = int_to_ptr.vmem [resolvable:$true] %s87_s0 }
  0x5b   :  { %s109_s1 = sshll.u32 %s4055_s21, 4  ;;  %s3913_s22 = scalar_lea.vmem %s88_s0, 16  ;;  %s110_s1 = int_to_ptr.vmem [resolvable:$true] %s109_s1 }
  0x5c   :  { %p3914_p7 = scmp.ne.s32.totalorder %s88_s0, %s3913_s22  ;;  %s3917_s23 = scalar_lea.vmem %s88_s0, 32 }
  0x5d   :  { %p3918_p8 = scmp.lt.s32.totalorder %s88_s0, %s88_s0  ;;  %p3919_p9 = scmp.lt.s32.totalorder %s3917_s23, %s3913_s22 }
  0x5f   :  { %68 = dma.hbm_to_vmem [thread:$0]  %s4716_s7, 3072, %s63_s2, [#allocation6], %s4052_s24, %s4052_s24, %s4053_s26  }
  0x60   :  { %p3920_p10 = por %p3919_p9, %p3918_p8 }
  0x62   :  { %p3921_p11 = pnand %p3920_p10, %p3914_p7 }
  0x64   :  { %3924 = shalt.err (!%p3921_p11)
}
  0x65   :  { %90 = dma.hbm_to_vmem [thread:$0]  %s4693_s6, 16, %s88_s0, [#allocation9]  }
  0x66   :  { %s3933_s3 = scalar_lea.vmem %s110_s1, 64  ;;  %p3938_p13 = scmp.lt.s32.totalorder %s110_s1, %s110_s1 }
  0x67   :  { %p3934_p12 = scmp.ne.s32.totalorder %s110_s1, %s3933_s3  ;;  %p3939_p0 = scmp.lt.s32.totalorder %s3933_s3, %s3933_s3 }
  0x69   :  { %p3940_p1 = por %p3939_p0, %p3938_p13 }
  0x6b   :  { %p3941_p2 = pnand %p3940_p1, %p3934_p12 }
  0x6d   :  { %3944 = shalt.err (!%p3941_p2)
}
  0x6e   :  { %112 = dma.hbm_to_vmem [thread:$0]  %s4695_s8, 64, %s110_s1, [#allocation12]  }
  0x6f   :  { %s4056_s11 = smov [#allocation16]   ;;  %s4057_s26 = smov [#allocation19]  }
  0x70   :  { %s131_s24 = sshll.u32 %s4056_s11, 4  ;;  %s151_s4 = sshll.u32 %s4057_s26, 4  ;;  %s132_s24 = int_to_ptr.vmem [resolvable:$true] %s131_s24  ;;  %s152_s4 = int_to_ptr.vmem [resolvable:$true] %s151_s4 }
  0x71   :  { %s3953_s29 = scalar_lea.vmem %s132_s24, 16  ;;  %s3957_s6 = scalar_lea.vmem %s132_s24, 32 }
  0x72   :  { %p3954_p3 = scmp.ne.s32.totalorder %s132_s24, %s3953_s29  ;;  %p3958_p4 = scmp.lt.s32.totalorder %s132_s24, %s132_s24 }
  0x73   :  { %p3959_p5 = scmp.lt.s32.totalorder %s3957_s6, %s3953_s29 }
  0x75   :  { %p3960_p6 = por %p3959_p5, %p3958_p4 }
  0x77   :  { %p3961_p7 = pnand %p3960_p6, %p3954_p3 }
  0x79   :  { %3964 = shalt.err (!%p3961_p7)
}
  0x7a   :  { %134 = dma.hbm_to_vmem [thread:$0]  %s4697_s10, 16, %s132_s24, [#allocation15]  }
  0x7b   :  { %s3973_s0 = scalar_lea.vmem %s152_s4, 16  ;;  %s3977_s8 = scalar_lea.vmem %s152_s4, 32 }
  0x7c   :  { %p3974_p8 = scmp.ne.s32.totalorder %s152_s4, %s3973_s0  ;;  %p3978_p9 = scmp.lt.s32.totalorder %s152_s4, %s152_s4 }
  0x7d   :  { %p3979_p10 = scmp.lt.s32.totalorder %s3977_s8, %s3973_s0 }
  0x7f   :  { %p3980_p11 = por %p3979_p10, %p3978_p9 }
  0x81   :  { %p3981_p12 = pnand %p3980_p11, %p3974_p8 }
  0x83   :  { %3984 = shalt.err (!%p3981_p12)
}
  0x84   :  { %154 = dma.hbm_to_vmem [thread:$0]  %s4699_s12, 16, %s152_s4, [#allocation18]  }
  0x85   :  { %s4058_s22 = smov [#allocation20]  }
  0x86   :  { %s170_s23 = sshll.u32 %s4058_s22, 4  ;;  %s171_s23 = int_to_ptr.vmem [resolvable:$true] %s170_s23 }
  0x87   :  { %s3993_s25 = scalar_lea.vmem %s171_s23, 512  ;;  %p3998_p0 = scmp.lt.s32.totalorder %s171_s23, %s171_s23 }
  0x88   :  { %p3994_p13 = scmp.ne.s32.totalorder %s171_s23, %s3993_s25  ;;  %p3999_p1 = scmp.lt.s32.totalorder %s3993_s25, %s3993_s25 }
  0x8a   :  { %p4000_p2 = por %p3999_p1, %p3998_p0 }
  0x8c   :  { %p4001_p3 = pnand %p4000_p2, %p3994_p13 }
  0x8e   :  { %4004 = shalt.err (!%p4001_p3)
}
  0x8f   :  { %176 = dma.hbm_to_vmem [thread:$0]  %s4705_s18, 512, %s171_s23, [#allocation21], %s4048_s27, %s4048_s27, %s4049_s28  }
  0x90   :  { %4025 = dma.done.wait [#allocation3], 512  }
  0x91   :  { %4026 = vsyncadd [#allocation3], 4294966784 }
  0x92   :  { %4027 = dma.done.wait [#allocation6], 3200  }
  0x93   :  { %4028 = vsyncadd [#allocation6], 4294964096 }
  0x94   :  { %4029 = dma.done.wait [#allocation9], 32  }
  0x95   :  { %4030 = vsyncadd [#allocation9], 4294967264 }
  0x96   :  { %4031 = dma.done.wait [#allocation12], 4160  }
  0x97   :  { %4032 = vsyncadd [#allocation12], 4294963136 }
  0x98   :  { %4033 = dma.done.wait [#allocation15], 4112  }
  0x99   :  { %4034 = vsyncadd [#allocation15], 4294963184 }
  0x9a   :  { %4035 = dma.done.wait [#allocation18], 32  }
  0x9b   :  { %4036 = vsyncadd [#allocation18], 4294967264 }
  0x9c   :  { %4037 = dma.done.wait [#allocation21], 512  }
  0x9d   :  { %4038 = vsyncadd [#allocation21], 4294966784  ;;  %v4059_v0 = vmov 0   ;;  %v3551_v1 = vld [vmem:[#allocation7 + $0xac] ss:$12 sps:$4 sm:$0xff]   ;;  %v4216_v25 = vld [vmem:[#allocation2 + $0x8] sm:$0xff]  }
  0x9e   :  { %448 = vmatprep.mubr.bf16.mxu0 %v4059_v0  ;;  %3550 = vset.pattern.permute.xlu0 %v4059_v0  ;;  %v3553_v2 = vld [vmem:[#allocation7 + $0xa8] ss:$12 sps:$4 sm:$0xff]   ;;  %v3556_v4 = vld [vmem:[#allocation7 + $0x90] ss:$12 sps:$4 sm:$0xff]   ;;  %v3559_v6 = vld [vmem:[#allocation7 + $0x78] ss:$12 sps:$4 sm:$0xff]  }
  0x9f   :  { %416 = vmatprep.subr.bf16.mxu0 %v3551_v1  ;;  %v3554_v3 = vld [vmem:[#allocation7 + $0x94] ss:$12 sps:$4 sm:$0xff]   ;;  %v3557_v5 = vld [vmem:[#allocation7 + $0x7c] ss:$12 sps:$4 sm:$0xff]   ;;  %v3560_v7 = vld [vmem:[#allocation7 + $0x64] ss:$12 sps:$4 sm:$0xff]  }
  0xa0   :  { %417 = vmatpush1.bf16.msra.mxu0 %v3553_v2  ;;  %v216_v8 = vld [vmem:[#allocation2] sm:$0xff]   ;;  %v3562_v9 = vld [vmem:[#allocation7 + $0x60] ss:$12 sps:$4 sm:$0xff]   ;;  %v3565_v13 = vld [vmem:[#allocation7 + $0x48] ss:$12 sps:$4 sm:$0xff]   ;;  %v4060_v29 = vmov 0.0  }
  0xa1   :  { %418 = vmatprep.subr.bf16.mxu0 %v3554_v3  ;;  %v3563_v10 = vld [vmem:[#allocation7 + $0x4c] ss:$12 sps:$4 sm:$0xff]   ;;  %v3579_v11 = vld [vmem:[#allocation7 + $0xb0] ss:$12 sps:$4 sm:$0xff]   ;;  %3347 = vmatprep.mubr.bf16.mxu1 %v216_v8  ;;  %v3566_v14 = vld [vmem:[#allocation7 + $0x34] ss:$12 sps:$4 sm:$0xff]  }
  0xa2   :  { %v3580_v12 = vld [vmem:[#allocation7 + $0x98] ss:$12 sps:$4 sm:$0xff]   ;;  %3331 = vmatprep.subr.bf16.mxu1 %v3579_v11  ;;  %v3581_v15 = vld [vmem:[#allocation7 + $0x80] ss:$12 sps:$4 sm:$0xff]   ;;  %v3568_v16 = vld [vmem:[#allocation7 + $0x30] ss:$12 sps:$4 sm:$0xff]  }
  0xa3   :  { %3332 = vmatpush3.bf16.msra.mxu1 %v3579_v11  ;;  %v3569_v17 = vld [vmem:[#allocation7 + $0x1c] ss:$12 sps:$4 sm:$0xff]   ;;  %v3571_v19 = vld [vmem:[#allocation7 + $0x18] ss:$12 sps:$4 sm:$0xff]   ;;  %v3574_v22 = vld [vmem:[#allocation7] ss:$12 sps:$4 sm:$0xff]  }
  0xa4   :  { %419 = vmatpush1.bf16.msra.mxu0 %v3556_v4  ;;  %3333 = vmatprep.subr.bf16.mxu1 %v3580_v12  ;;  %v3582_v18 = vld [vmem:[#allocation7 + $0x68] ss:$12 sps:$4 sm:$0xff]   ;;  %v3572_v20 = vld [vmem:[#allocation7 + $0x4] ss:$12 sps:$4 sm:$0xff]   ;;  %v3585_v24 = vld [vmem:[#allocation7 + $0x20] ss:$12 sps:$4 sm:$0xff]  }
  0xa5   :  { %420 = vmatprep.subr.bf16.mxu0 %v3557_v5  ;;  %v3583_v21 = vld [vmem:[#allocation7 + $0x50] ss:$12 sps:$4 sm:$0xff]   ;;  %v3584_v23 = vld [vmem:[#allocation7 + $0x38] ss:$12 sps:$4 sm:$0xff]   ;;  %v3586_v26 = vld [vmem:[#allocation7 + $0x8] ss:$12 sps:$4 sm:$0xff]  }
  0xa6   :  { %v4219_v27 = vld [vmem:[#allocation2 + $0x10] sm:$0xff]   ;;  %v4224_v28 = vld [vmem:[#allocation2 + $0x18] sm:$0xff]   ;;  %vm4061_vm0 = vmmov 0   ;;  %vm1091_vm1 = vcmask 1043456   ;;  %vm983_vm2 = vcmask 64512   ;;  %s4717_s27 = sld [smem:[#allocation35_spill]] }
  0xa7   :  { %3334 = vmatpush3.bf16.msra.mxu1 %v3580_v12  ;;  %s4718_s29 = sld [smem:[#allocation33_spill]]  ;;  %vm2695_vm3 = vcmask 1041409   ;;  %vm2698_vm4 = vcmask 1042434   ;;  %vm2701_vm5 = vcmask 1043459   ;;  %vm2704_vm6 = vcmask 1044484   ;;  %s4063_s24 = smov [#allocation22]  }
  0xa8   :  { %421 = vmatpush1.bf16.msra.mxu0 %v3559_v6  ;;  %3335 = vmatprep.subr.bf16.mxu1 %v3581_v15  ;;  %vm2707_vm7 = vcmask 1045509   ;;  %vm2710_vm8 = vcmask 1046534   ;;  %vm2713_vm9 = vcmask 1047559   ;;  %vm2967_vm10 = vcmask 523264   ;;  %s3018_s26 = sshll.u32 %s4063_s24, 4  ;;  %s3019_s26 = int_to_ptr.vmem [resolvable:$true] %s3018_s26 }
  0xa9   :  { %422 = vmatprep.subr.bf16.mxu0 %v3560_v7  ;;  %p4010_p5 = scmp.lt.s32.totalorder %s3019_s26, %s3019_s26 }
  0xab   :  { %3336 = vmatpush3.bf16.msra.mxu1 %v3581_v15 }
  0xac   :  { %423 = vmatpush1.bf16.msra.mxu0 %v3562_v9  ;;  %3337 = vmatprep.subr.bf16.mxu1 %v3582_v18 }
  0xad   :  { %424 = vmatprep.subr.bf16.mxu0 %v3563_v10 }
  0xaf   :  { %3338 = vmatpush3.bf16.msra.mxu1 %v3582_v18 }
  0xb0   :  { %425 = vmatpush1.bf16.msra.mxu0 %v3565_v13  ;;  %3339 = vmatprep.subr.bf16.mxu1 %v3583_v21 }
  0xb1   :  { %426 = vmatprep.subr.bf16.mxu0 %v3566_v14 }
  0xb3   :  { %3340 = vmatpush3.bf16.msra.mxu1 %v3583_v21 }
  0xb4   :  { %427 = vmatpush1.bf16.msra.mxu0 %v3568_v16  ;;  %3341 = vmatprep.subr.bf16.mxu1 %v3584_v23 }
  0xb5   :  { %428 = vmatprep.subr.bf16.mxu0 %v3569_v17 }
  0xb7   :  { %3342 = vmatpush3.bf16.msra.mxu1 %v3584_v23  ;;  %v570_v23 = vld [vmem:[#allocation5] sm:$0xff] }
  0xb8   :  { %429 = vmatpush1.bf16.msra.mxu0 %v3571_v19  ;;  %3343 = vmatprep.subr.bf16.mxu1 %v3585_v24 }
  0xb9   :  { %430 = vmatprep.subr.bf16.mxu0 %v3572_v20  ;;  %v4062_v20 = vmov 1966171168  }
  0xba   :  { %v576_v21 = vunpack.c.l.s4 %v4062_v20 }
  0xbb   :  { %3344 = vmatpush3.bf16.msra.mxu1 %v3585_v24  ;;  %v3061_v24 = vadd.f32 -1.0, %v570_v23 }
  0xbc   :  { %431 = vmatpush1.bf16.msra.mxu0 %v3574_v22  ;;  %3345 = vmatprep.subr.bf16.mxu1 %v3586_v26  ;;  %v578_v22 = vlaneseq }
  0xbd   :  { %3379 = vmatprep.subr.bf16.mxu0 %v4060_v29 }
  0xbf   :  { %449 = vmatmul.mubr.bf16.vlgmr.msra.gmra.mxu0 %v216_v8  ;;  %3346 = vmatpush3.bf16.msra.mxu1 %v3586_v26  ;;  %v577_v26 = vunpack.c.0.s8 %v576_v21 }
  0xc0   :  { %458 = vmatprep.mubr.bf16.mxu0 %v4059_v0  ;;  %3355 = vmatprep.subr.bf16.mxu1 %v4060_v29 }
  0xc2   :  { %3348 = vmatmul.mubr.bf16.vlgmr.msra.gmra.mxu1 %v4216_v25 }
  0xc3   :  { %3351 = vmatprep.mubr.bf16.mxu1 %v4219_v27 }
  0xc7   :  { %459 = vmatmul.mubr.bf16.gmra.mxu0 %v4216_v25 }
  0xc8   :  { %468 = vmatprep.mubr.bf16.mxu0 %v4059_v0 }
  0xca   :  { %3352 = vmatmul.mubr.bf16.gmra.mxu1 %v4224_v28 }
  0xcb   :  { %3357 = vmatprep.mubr.msk.bf16.mxu1 %vm4061_vm0, %v4060_v29 }
  0xcf   :  { %469 = vmatmul.mubr.bf16.gmra.mxu0 %v4219_v27 }
  0xd0   :  { %478 = vmatprep.mubr.bf16.mxu0 %v4059_v0 }
  0xd7   :  { %479 = vmatmul.mubr.bf16.gmra.mxu0 %v4224_v28 }
  0xd8   :  { %3381 = vmatprep.mubr.msk.bf16.mxu0 %vm4061_vm0, %v4060_v29 }
 0x17f   :  { %v450_v30 = vpop.f32.mrf.mxu0 }
 0x180   :  { %v554_v36 = vpack.c.bf16 %v450_v30, %v450_v30  ;;  %v4280_v30 = vshrl.u32 %v578_v22, 7 }
 0x181   :  { %v452_v31 = vpop.f32.mrf.mxu0 }
 0x182   :  { %v562_v32 = vpack.c.bf16 %v452_v31, %v452_v31  ;;  %v3349_v40 = vpop.f32.mrf.mxu1  ;;  %v572_v31 = vmul.f32 1e+09, %v3061_v24 }
 0x183   :  { %v454_v33 = vpop.f32.mrf.mxu0  ;;  %v1082_v41 = vpack.c.bf16 %v3349_v40, %v3349_v40 }
 0x184   :  { %3356 = vmatpush3.bf16.xpose.msra.mxu1 %v562_v32  ;;  %v523_v43 = vpop.f32.mrf.mxu1  ;;  %v555_v48 = vpack.c.bf16 %v454_v33, %v454_v33  ;;  %v580_v32 = vsub.s32 %v577_v26, %v4280_v30 }
 0x185   :  { %v456_v34 = vpop.f32.mrf.mxu0  ;;  %3361 = vmatprep.subr.bf16.mxu1 %v4060_v29  ;;  %v4242_v44 = vsel %vm1091_vm1, %v1082_v41, 0  ;;  %v1080_v8 = vpack.c.bf16 %v523_v43, %v523_v43 }
 0x186   :  { %v563_v38 = vpack.c.bf16 %v456_v34, %v456_v34  ;;  %v3350_v46 = vpop.f32.mrf.mxu1  ;;  %v581_v33 = vrot.slane %v572_v31, %v580_v32 }
 0x187   :  { %v460_v35 = vpop.f32.mrf.mxu0  ;;  %v1083_v47 = vpack.c.bf16 %v3350_v46, %v3350_v46  ;;  %v1093_v12 = vsel %vm1091_vm1, %v1080_v8, 0 }
 0x188   :  { %v526_v50 = vpop.f32.mrf.mxu1  ;;  %v556_v3 = vpack.c.bf16 %v460_v35, %v460_v35  ;;  %v597_v34 = vrot.slane %v581_v33, %v580_v32  ;;  %v4284_v35 = vsub.s32 0, %v4280_v30 }
 0x189   :  { %v462_v37 = vpop.f32.mrf.mxu0  ;;  %v4245_v53 = vsel %vm1091_vm1, %v1083_v47, 0  ;;  %v1081_v17 = vpack.c.bf16 %v526_v50, %v526_v50 }
 0x18a   :  { %v564_v51 = vpack.c.bf16 %v462_v37, %v462_v37  ;;  %v3353_v55 = vpop.f32.mrf.mxu1  ;;  %v589_v37 = vcombine.high %v581_v33, %v581_v33 }
 0x18b   :  { %v464_v39 = vpop.f32.mrf.mxu0  ;;  %3358 = vmatmul.mubr.bf16.vlgmr.msra.gmra.mxu1 %v554_v36  ;;  %v1086_v56 = vpack.c.bf16 %v3353_v55, %v3353_v55  ;;  %v1139_v19 = vsel %vm1091_vm1, %v1081_v17, 0  ;;  %v626_v36 = vrot.slane %v597_v34, %v4284_v35 }
 0x18c   :  { %3362 = vmatpush3.bf16.xpose.msra.mxu1 %v563_v38  ;;  %3363 = vmatprep.mubr.msk.bf16.mxu1 %vm4061_vm0, %v4060_v29  ;;  %v539_v58 = vpop.f32.mrf.mxu1  ;;  %v557_v10 = vpack.c.bf16 %v464_v39, %v464_v39  ;;  %v611_v41 = vrot.slane %v589_v37, %v580_v32 }
 0x18d   :  { %v466_v42 = vpop.f32.mrf.mxu0  ;;  %3367 = vmatprep.subr.bf16.mxu1 %v4060_v29  ;;  %v4252_v59 = vsel %vm1091_vm1, %v1086_v56, 0  ;;  %v1084_v60 = vpack.c.bf16 %v539_v58, %v539_v58 }
 0x18e   :  { %v3354_v63 = vpop.f32.mrf.mxu1  ;;  %v565_v5 = vpack.c.bf16 %v466_v42, %v466_v42  ;;  %v574_v42 = vcombine.high %v572_v31, %v572_v31  ;;  %v630_v47 = vrot.slane %v611_v41, %v4284_v35 }
 0x18f   :  { %v470_v45 = vpop.f32.mrf.mxu0  ;;  %v4255_v1 = vsel %vm1091_vm1, %v1084_v60, 0  ;;  %v1087_v2 = vpack.c.bf16 %v3354_v63, %v3354_v63 }
 0x190   :  { %v558_v61 = vpack.c.bf16 %v470_v45, %v470_v45  ;;  %v4287_v38 = vpop.f32.mrf.mxu1 }
 0x191   :  { %v472_v49 = vpop.f32.mrf.mxu0  ;;  %v4258_v7 = vsel %vm1091_vm1, %v1087_v2, 0 }
 0x192   :  { %v566_v52 = vpack.c.bf16 %v472_v49, %v472_v49 }
 0x193   :  { %v474_v54 = vpop.f32.mrf.mxu0  ;;  %3364 = vmatmul.mubr.bf16.vlgmr.msra.gmra.mxu1 %v555_v48  ;;  %v588_v48 = vrot.slane %v574_v42, %v580_v32 }
 0x194   :  { %3368 = vmatpush3.bf16.xpose.msra.mxu1 %v564_v51  ;;  %3380 = vmatpush3.bf16.xpose.msra.mxu0 %v566_v52  ;;  %v559_v15 = vpack.c.bf16 %v474_v54, %v474_v54  ;;  %v619_v52 = vcombine.high %v597_v34, %v597_v34 }
 0x195   :  { %v476_v57 = vpop.f32.mrf.mxu0  ;;  %3369 = vmatprep.mubr.msk.bf16.mxu1 %vm4061_vm0, %v4060_v29  ;;  %3373 = vmatprep.subr.bf16.mxu1 %v4060_v29  ;;  %v604_v54 = vrot.slane %v588_v48, %v580_v32 }
 0x196   :  { %3391 = vmatprep.subr.bf16.mxu0 %v4060_v29  ;;  %v567_v11 = vpack.c.bf16 %v476_v57, %v476_v57  ;;  %v634_v58 = vrot.slane %v619_v52, %v4284_v35 }
 0x197   :  { %v480_v62 = vpop.f32.mrf.mxu0  ;;  %v642_v60 = vrot.slane %v604_v54, %v4284_v35 }
 0x198   :  { %v560_v9 = vpack.c.bf16 %v480_v62, %v480_v62 }
 0x199   :  { %v482_v4 = vpop.f32.mrf.mxu0 }
 0x19a   :  { %v568_v6 = vpack.c.bf16 %v482_v4, %v482_v4  ;;  %v621_v4 = vcombine.high %v611_v41, %v611_v41 }
 0x19b   :  { %3370 = vmatmul.mubr.bf16.vlgmr.msra.gmra.mxu1 %v556_v3  ;;  %3382 = vmatmul.mubr.bf16.vlgmr.msra.gmra.mxu0 %v558_v61  ;;  %v484_v13 = vpop.f32.mrf.mxu0 }
 0x19c   :  { %3374 = vmatpush3.bf16.xpose.msra.mxu1 %v565_v5  ;;  %3392 = vmatpush3.bf16.xpose.msra.mxu0 %v568_v6  ;;  %v561_v18 = vpack.c.bf16 %v484_v13, %v484_v13  ;;  %v620_v5 = vcombine.high %v604_v54, %v604_v54  ;;  %v638_v13 = vrot.slane %v621_v4, %v4284_v35 }
 0x19d   :  { %3375 = vmatprep.mubr.msk.bf16.mxu1 %vm4061_vm0, %v4060_v29  ;;  %3393 = vmatprep.mubr.msk.bf16.mxu0 %vm4061_vm0, %v4060_v29  ;;  %v486_v14 = vpop.f32.mrf.mxu0 }
 0x19e   :  { %3385 = vmatprep.subr.bf16.mxu1 %v4060_v29  ;;  %3403 = vmatprep.subr.bf16.mxu0 %v4060_v29  ;;  %v569_v16 = vpack.c.bf16 %v486_v14, %v486_v14  ;;  %v650_v14 = vrot.slane %v620_v5, %v4284_v35 }
 0x1a3   :  { %3376 = vmatmul.mubr.bf16.vlgmr.msra.gmra.mxu1 %v557_v10  ;;  %3394 = vmatmul.mubr.bf16.vlgmr.msra.gmra.mxu0 %v560_v9 }
 0x1a4   :  { %3386 = vmatpush3.bf16.xpose.msra.mxu1 %v567_v11  ;;  %3387 = vmatprep.mubr.msk.bf16.mxu1 %vm4061_vm0, %v4060_v29 }
 0x1a5   :  { %3397 = vmatprep.subr.bf16.mxu1 %v4060_v29  ;;  %3404 = vmatpush3.bf16.msra.mxu0 %v1093_v12 }
 0x1a6   :  { %3405 = vmatprep.mubr.msk.bf16.mxu0 %vm4061_vm0, %v4060_v29  ;;  %3415 = vmatprep.subr.bf16.mxu0 %v4060_v29 }
 0x1ab   :  { %3388 = vmatmul.mubr.bf16.vlgmr.msra.gmra.mxu1 %v559_v15  ;;  %v590_v15 = vcombine.high %v588_v48, %v588_v48 }
 0x1ac   :  { %3398 = vmatpush3.bf16.xpose.msra.mxu1 %v569_v16  ;;  %3399 = vmatprep.mubr.msk.bf16.mxu1 %vm4061_vm0, %v4060_v29 }
 0x1ad   :  { %3409 = vmatprep.subr.bf16.mxu1 %v4060_v29  ;;  %v618_v22 = vrot.slane %v590_v15, %v580_v32 }
 0x1b3   :  { %3400 = vmatmul.mubr.bf16.vlgmr.msra.gmra.mxu1 %v561_v18 }
 0x1b4   :  { %3410 = vmatpush3.bf16.msra.mxu1 %v1139_v19  ;;  %3411 = vmatprep.mubr.msk.bf16.mxu1 %vm4061_vm0, %v4060_v29 }
 0x1b5   :  { %3421 = vmatprep.subr.bf16.mxu1 %v4060_v29 }
 0x24b   :  { %v697_v39 = vpop.f32.mrf.mxu1 }
 0x24c   :  { %v4289_v40 = vadd.f32 %v697_v39, %v626_v36  ;;  %v646_v36 = vrot.slane %v618_v22, %v4284_v35 }
 0x24d   :  { %v3359_v43 = vpop.f32.mrf.mxu1 }
 0x24e   :  { %v984_v45 = vsel %vm983_vm2, %v4289_v40, -inf  ;;  %v622_v43 = vcombine.high %v618_v22, %v618_v22 }
 0x24f   :  { %985 = vmax.xlane.f32.xlu0 %v984_v45  ;;  %v700_v46 = vpop.f32.mrf.mxu1 }
 0x251   :  { %v3360_v49 = vpop.f32.mrf.mxu1 }
 0x253   :  { %v737_v50 = vpop.f32.mrf.mxu1 }
 0x254   :  { %v4294_v51 = vadd.f32 %v737_v50, %v630_v47  ;;  %v654_v47 = vrot.slane %v622_v43, %v4284_v35 }
 0x255   :  { %v3365_v55 = vpop.f32.mrf.mxu1 }
 0x256   :  { %v987_v56 = vsel %vm983_vm2, %v4294_v51, -inf }
 0x257   :  { %988 = vmax.xlane.f32.xlu0 %v987_v56  ;;  %v740_v57 = vpop.f32.mrf.mxu1 }
 0x259   :  { %v3366_v61 = vpop.f32.mrf.mxu1 }
 0x25b   :  { %v777_v62 = vpop.f32.mrf.mxu1  ;;  %v857_v63 = vpop.f32.mrf.mxu0 }
 0x25c   :  { %v778_v2 = vadd.f32 %v777_v62, %v634_v58  ;;  %v858_v3 = vadd.f32 %v857_v63, %v642_v60 }
 0x25d   :  { %v3371_v6 = vpop.f32.mrf.mxu1  ;;  %v3383_v8 = vpop.f32.mrf.mxu0 }
 0x25e   :  { %v990_v9 = vsel %vm983_vm2, %v778_v2, -inf  ;;  %v996_v10 = vsel %vm983_vm2, %v858_v3, -inf }
 0x25f   :  { %991 = vmax.xlane.f32.xlu1 %v990_v9  ;;  %v780_v11 = vpop.f32.mrf.mxu1  ;;  %997 = vmax.xlane.f32.xlu0 %v996_v10  ;;  %v860_v12 = vpop.f32.mrf.mxu0 }
 0x261   :  { %v3372_v16 = vpop.f32.mrf.mxu1  ;;  %v3384_v17 = vpop.f32.mrf.mxu0 }
 0x263   :  { %v817_v18 = vpop.f32.mrf.mxu1  ;;  %v937_v19 = vpop.f32.mrf.mxu0 }
 0x264   :  { %v818_v20 = vadd.f32 %v817_v18, %v638_v13  ;;  %v938_v21 = vadd.f32 %v937_v19, %v650_v14 }
 0x265   :  { %v3377_v23 = vpop.f32.mrf.mxu1  ;;  %v3395_v24 = vpop.f32.mrf.mxu0 }
 0x266   :  { %v993_v26 = vsel %vm983_vm2, %v818_v20, -inf  ;;  %v1002_v31 = vsel %vm983_vm2, %v938_v21, -inf }
 0x267   :  { %994 = vmax.xlane.f32.xlu1 %v993_v26  ;;  %v820_v33 = vpop.f32.mrf.mxu1  ;;  %1003 = vmax.xlane.f32.xlu0 %v1002_v31  ;;  %v940_v34 = vpop.f32.mrf.mxu0 }
 0x269   :  { %v3378_v37 = vpop.f32.mrf.mxu1  ;;  %v3396_v39 = vpop.f32.mrf.mxu0 }
 0x26b   :  { %v897_v41 = vpop.f32.mrf.mxu1 }
 0x26c   :  { %v898_v42 = vadd.f32 %v897_v41, %v646_v36 }
 0x26d   :  { %v3389_v45 = vpop.f32.mrf.mxu1 }
 0x26e   :  { %v999_v32 = vsel %vm983_vm2, %v898_v42, -inf }
 0x26f   :  { %1000 = vmax.xlane.f32.xlu1 %v999_v32  ;;  %v900_v46 = vpop.f32.mrf.mxu1 }
 0x271   :  { %v3390_v48 = vpop.f32.mrf.mxu1 }
 0x273   :  { %v977_v49 = vpop.f32.mrf.mxu1 }
 0x274   :  { %v978_v50 = vadd.f32 %v977_v49, %v654_v47 }
 0x275   :  { %v3401_v52 = vpop.f32.mrf.mxu1 }
 0x276   :  { %v1005_v54 = vsel %vm983_vm2, %v978_v50, -inf }
 0x277   :  { %1006 = vmax.xlane.f32.xlu1 %v1005_v54  ;;  %v980_v55 = vpop.f32.mrf.mxu1 }
 0x279   :  { %v3402_v56 = vpop.f32.mrf.mxu1 }
 0x2d8   :  { %v986_v57 = vpop.xlane.xlu0 %985 }
 0x2d9   :  { %v1008_v58 = vsub.f32 %v4289_v40, %v986_v57 }
 0x2db   :  { %v1016_v60 = vmul.f32 1.442695, %v1008_v58 }
 0x2dd   :  { %3699 = vpow2.f32 %v1016_v60 }
 0x2e0   :  { %v989_v61 = vpop.xlane.xlu0 %988 }
 0x2e1   :  { %v1009_v62 = vsub.f32 %v4294_v51, %v989_v61 }
 0x2e3   :  { %v1018_v63 = vmul.f32 1.442695, %v1009_v62 }
 0x2e5   :  { %3701 = vpow2.f32 %v1018_v63 }
 0x2e8   :  { %v992_v4 = vpop.xlane.xlu1 %991  ;;  %v998_v5 = vpop.xlane.xlu0 %997 }
 0x2e9   :  { %v1010_v6 = vsub.f32 %v778_v2, %v992_v4  ;;  %v1012_v8 = vsub.f32 %v858_v3, %v998_v5  ;;  %v1085_v4 = vpack.c.bf16 %v4287_v38, %v4287_v38 }
 0x2ea   :  { %v3700_v9 = vpop.eup %3699 }
 0x2eb   :  { %v1020_v10 = vmul.f32 1.442695, %v1010_v6  ;;  %v1024_v11 = vmul.f32 1.442695, %v1012_v8  ;;  %v1032_v12 = vsel %vm983_vm2, %v3700_v9, 0.0 }
 0x2ec   :  { %1033 = vadd.xlane.f32.xlu0 %v1032_v12 }
 0x2ed   :  { %3703 = vpow2.f32 %v1020_v10 }
 0x2ee   :  { %3705 = vpow2.f32 %v1024_v11  ;;  %v1323_v11 = vsel %vm1091_vm1, %v1085_v4, 0 }
 0x2f0   :  { %v995_v40 = vpop.xlane.xlu1 %994  ;;  %v1004_v13 = vpop.xlane.xlu0 %1003 }
 0x2f1   :  { %v1011_v14 = vsub.f32 %v818_v20, %v995_v40  ;;  %v1014_v15 = vsub.f32 %v938_v21, %v1004_v13 }
 0x2f2   :  { %v3702_v16 = vpop.eup %3701 }
 0x2f3   :  { %v1022_v51 = vmul.f32 1.442695, %v1011_v14  ;;  %v1028_v17 = vmul.f32 1.442695, %v1014_v15  ;;  %v1035_v18 = vsel %vm983_vm2, %v3702_v16, 0.0 }
 0x2f4   :  { %1036 = vadd.xlane.f32.xlu1 %v1035_v18  ;;  %v3591_v18 = vld [vmem:[%s4717_s27 + $0x18] sm:$0xff]  }
 0x2f5   :  { %3707 = vpow2.f32 %v1022_v51 }
 0x2f6   :  { %3709 = vpow2.f32 %v1028_v17  ;;  %v3589_v17 = vld [vmem:[%s4717_s27 + $0x28] sm:$0xff]  }
 0x2f8   :  { %v1001_v2 = vpop.xlane.xlu1 %1000 }
 0x2f9   :  { %v1013_v3 = vsub.f32 %v898_v42, %v1001_v2  ;;  %v3592_v2 = vld [vmem:[%s4717_s27 + $0x10] sm:$0xff]  }
 0x2fa   :  { %v3704_v19 = vpop.eup %3703 }
 0x2fb   :  { %v1026_v22 = vmul.f32 1.442695, %v1013_v3  ;;  %v1038_v23 = vsel %vm983_vm2, %v3704_v19, 0.0  ;;  %v3706_v24 = vpop.eup %3705  ;;  %v3593_v3 = vld [vmem:[%s4717_s27 + $0x8] sm:$0xff]  }
 0x2fc   :  { %1039 = vadd.xlane.f32.xlu0 %v1038_v23  ;;  %v1044_v20 = vsel %vm983_vm2, %v3706_v24, 0.0 }
 0x2fd   :  { %3711 = vpow2.f32 %v1026_v22 }
 0x300   :  { %1045 = vadd.xlane.f32.xlu0 %v1044_v20  ;;  %v1007_v21 = vpop.xlane.xlu1 %1006 }
 0x301   :  { %v1015_v26 = vsub.f32 %v978_v50, %v1007_v21 }
 0x302   :  { %v3708_v31 = vpop.eup %3707 }
 0x303   :  { %v4316_v33 = vpop.eup %3709  ;;  %v1030_v34 = vmul.f32 1.442695, %v1015_v26  ;;  %v1041_v36 = vsel %vm983_vm2, %v3708_v31, 0.0 }
 0x304   :  { %v1050_v37 = vsel %vm983_vm2, %v4316_v33, 0.0  ;;  %1042 = vadd.xlane.f32.xlu1 %v1041_v36 }
 0x305   :  { %3713 = vpow2.f32 %v1030_v34  ;;  %1051 = vadd.xlane.f32.xlu0 %v1050_v37 }
 0x30a   :  { %v4321_v39 = vpop.eup %3711 }
 0x30b   :  { %v1047_v41 = vsel %vm983_vm2, %v4321_v39, 0.0 }
 0x30c   :  { %1048 = vadd.xlane.f32.xlu1 %v1047_v41 }
 0x312   :  { %v4325_v42 = vpop.eup %3713 }
 0x313   :  { %v1053_v43 = vsel %vm983_vm2, %v4325_v42, 0.0 }
 0x314   :  { %1054 = vadd.xlane.f32.xlu1 %v1053_v43 }
 0x375   :  { %v1034_v45 = vpop.xlane.xlu0 %1033 }
 0x376   :  { %3715 = vrcp.f32 %v1034_v45 }
 0x37d   :  { %v1037_v32 = vpop.xlane.xlu1 %1036 }
 0x37e   :  { %3717 = vrcp.f32 %v1037_v32 }
 0x383   :  { %v3716_v46 = vpop.eup %3715 }
 0x384   :  { %v1064_v47 = vmul.f32 %v3716_v46, %v3700_v9 }
 0x385   :  { %v1040_v48 = vpop.xlane.xlu0 %1039 }
 0x386   :  { %3719 = vrcp.f32 %v1040_v48  ;;  %v1072_v49 = vpack.c.bf16 %v1064_v47, %v1064_v47 }
 0x388   :  { %3406 = vmatmul.mubr.msk.bf16.vlgmr.msra.gmra.mxu0 %vm983_vm2, %v1072_v49 }
 0x389   :  { %3416 = vmatpush3.bf16.msra.mxu0 %v4242_v44  ;;  %v1046_v50 = vpop.xlane.xlu0 %1045  ;;  %3417 = vmatprep.mubr.msk.bf16.mxu0 %vm4061_vm0, %v4060_v29 }
 0x38a   :  { %3721 = vrcp.f32 %v1046_v50  ;;  %3427 = vmatprep.subr.bf16.mxu0 %v4060_v29 }
 0x38b   :  { %v3718_v52 = vpop.eup %3717 }
 0x38c   :  { %v1065_v54 = vmul.f32 %v3718_v52, %v3702_v16 }
 0x38d   :  { %v1043_v55 = vpop.xlane.xlu1 %1042 }
 0x38e   :  { %3723 = vrcp.f32 %v1043_v55  ;;  %v1073_v56 = vpack.c.bf16 %v1065_v54, %v1065_v54  ;;  %v1052_v57 = vpop.xlane.xlu0 %1051 }
 0x38f   :  { %3725 = vrcp.f32 %v1052_v57 }
 0x390   :  { %3412 = vmatmul.mubr.msk.bf16.vlgmr.msra.gmra.mxu1 %vm983_vm2, %v1073_v56 }
 0x391   :  { %3422 = vmatpush3.bf16.msra.mxu1 %v4245_v53  ;;  %3423 = vmatprep.mubr.msk.bf16.mxu1 %vm4061_vm0, %v4060_v29 }
 0x392   :  { %3433 = vmatprep.subr.bf16.mxu1 %v4060_v29 }
 0x393   :  { %v3720_v44 = vpop.eup %3719 }
 0x394   :  { %v1066_v58 = vmul.f32 %v3720_v44, %v3704_v19  ;;  %v3594_v19 = vld [vmem:[%s4717_s27] sm:$0xff]  }
 0x395   :  { %v1049_v60 = vpop.xlane.xlu1 %1048 }
 0x396   :  { %3727 = vrcp.f32 %v1049_v60  ;;  %v1074_v61 = vpack.c.bf16 %v1066_v58, %v1066_v58 }
 0x397   :  { %v3722_v62 = vpop.eup %3721 }
 0x398   :  { %3418 = vmatmul.mubr.msk.bf16.vlgmr.msra.gmra.mxu0 %vm983_vm2, %v1074_v61  ;;  %v1068_v53 = vmul.f32 %v3722_v62, %v3706_v24 }
 0x399   :  { %3428 = vmatpush3.bf16.msra.mxu0 %v4255_v1  ;;  %3429 = vmatprep.mubr.msk.bf16.mxu0 %vm4061_vm0, %v4060_v29  ;;  %v3587_v1 = vld [vmem:[%s4717_s27 + $0x38] sm:$0xff]  }
 0x39a   :  { %3439 = vmatprep.subr.bf16.mxu0 %v4060_v29  ;;  %v1076_v9 = vpack.c.bf16 %v1068_v53, %v1068_v53 }
 0x39b   :  { %v3724_v63 = vpop.eup %3723 }
 0x39c   :  { %v1067_v5 = vmul.f32 %v3724_v63, %v3708_v31  ;;  %v3726_v10 = vpop.eup %3725 }
 0x39d   :  { %v1055_v6 = vpop.xlane.xlu1 %1054  ;;  %v1070_v38 = vmul.f32 %v3726_v10, %v4316_v33 }
 0x39e   :  { %3729 = vrcp.f32 %v1055_v6  ;;  %v1075_v8 = vpack.c.bf16 %v1067_v5, %v1067_v5  ;;  %v3763_v6 = vld [vmem:[#allocation2] sm:$0xff]  }
 0x39f   :  { %v1078_v14 = vpack.c.bf16 %v1070_v38, %v1070_v38  ;;  %v225_v38 = vunpack.c.h.bf16 %v3763_v6 }
 0x3a0   :  { %3424 = vmatmul.mubr.msk.bf16.vlgmr.msra.gmra.mxu1 %vm983_vm2, %v1075_v8  ;;  %3430 = vmatmul.mubr.msk.bf16.vlgmr.msra.gmra.mxu0 %vm983_vm2, %v1076_v9  ;;  %v224_v8 = vunpack.c.l.bf16 %v3763_v6 }
 0x3a1   :  { %3434 = vmatpush3.bf16.msra.mxu1 %v1323_v11  ;;  %3440 = vmatpush3.bf16.msra.mxu0 %v4252_v59  ;;  %v3588_v59 = vld [vmem:[%s4717_s27 + $0x30] sm:$0xff]  }
 0x3a2   :  { %3435 = vmatprep.mubr.msk.bf16.mxu1 %vm4061_vm0, %v4060_v29  ;;  %3441 = vmatprep.mubr.msk.bf16.mxu0 %vm4061_vm0, %v4060_v29 }
 0x3a3   :  { %v3728_v12 = vpop.eup %3727  ;;  %3445 = vmatprep.subr.bf16.mxu1 %v4060_v29  ;;  %3451 = vmatprep.subr.bf16.mxu0 %v3587_v1 }
 0x3a4   :  { %v1069_v40 = vmul.f32 %v3728_v12, %v4321_v39 }
 0x3a6   :  { %v1077_v13 = vpack.c.bf16 %v1069_v40, %v1069_v40 }
 0x3a8   :  { %3436 = vmatmul.mubr.msk.bf16.vlgmr.msra.gmra.mxu1 %vm983_vm2, %v1077_v13  ;;  %3442 = vmatmul.mubr.msk.bf16.vlgmr.msra.gmra.mxu0 %vm983_vm2, %v1078_v14  ;;  %v3764_v14 = vld [vmem:[#allocation2 + $0x8] sm:$0xff]  }
 0x3a9   :  { %3446 = vmatpush3.bf16.msra.mxu1 %v4258_v7  ;;  %3447 = vmatprep.mubr.msk.bf16.mxu1 %vm4061_vm0, %v4060_v29  ;;  %v3590_v7 = vld [vmem:[%s4717_s27 + $0x20] sm:$0xff]  }
 0x3aa   :  { %3452 = vmatpush3.bf16.msra.mxu0 %v3587_v1  ;;  %v226_v1 = vunpack.c.l.bf16 %v4216_v25 }
 0x3ab   :  { %v3730_v15 = vpop.eup %3729  ;;  %3453 = vmatprep.subr.bf16.mxu0 %v3588_v59 }
 0x3ac   :  { %v1071_v16 = vmul.f32 %v3730_v15, %v4325_v42 }
 0x3ae   :  { %v1079_v51 = vpack.c.bf16 %v1071_v16, %v1071_v16  ;;  %3454 = vmatpush3.bf16.msra.mxu0 %v3588_v59  ;;  %v227_v59 = vunpack.c.h.bf16 %v3764_v14 }
 0x3af   :  { %3455 = vmatprep.subr.bf16.mxu0 %v3589_v17 }
 0x3b0   :  { %3448 = vmatmul.mubr.msk.bf16.vlgmr.msra.gmra.mxu1 %vm983_vm2, %v1079_v51  ;;  %v228_v51 = vunpack.c.l.bf16 %v4219_v27 }
 0x3b1   :  { %1959 = vmatprep.mubr.bf16.mxu1 %v4059_v0 }
 0x3b2   :  { %3456 = vmatpush3.bf16.msra.mxu0 %v3589_v17 }
 0x3b3   :  { %3457 = vmatprep.subr.bf16.mxu0 %v3590_v7 }
 0x3b6   :  { %3458 = vmatpush3.bf16.msra.mxu0 %v3590_v7 }
 0x3b7   :  { %3459 = vmatprep.subr.bf16.mxu0 %v3591_v18 }
 0x3ba   :  { %3460 = vmatpush3.bf16.msra.mxu0 %v3591_v18  ;;  %v230_v18 = vunpack.c.l.bf16 %v4224_v28 }
 0x3bb   :  { %3461 = vmatprep.subr.bf16.mxu0 %v3592_v2 }
 0x3be   :  { %3462 = vmatpush3.bf16.msra.mxu0 %v3592_v2  ;;  %v229_v2 = vunpack.c.h.bf16 %v4219_v27 }
 0x3bf   :  { %3463 = vmatprep.subr.bf16.mxu0 %v3593_v3 }
 0x3c2   :  { %3464 = vmatpush3.bf16.msra.mxu0 %v3593_v3 }
 0x3c3   :  { %3465 = vmatprep.subr.bf16.mxu0 %v3594_v19 }
 0x3c6   :  { %3466 = vmatpush3.bf16.msra.mxu0 %v3594_v19 }
 0x448   :  { %v1129_v22 = vpop.f32.mrf.mxu0 }
 0x44a   :  { %v3407_v23 = vpop.f32.mrf.mxu0 }
 0x44b   :  { %v231_v23 = vunpack.c.h.bf16 %v4224_v28 }
 0x44c   :  { %v1132_v24 = vpop.f32.mrf.mxu0 }
 0x44e   :  { %v3408_v20 = vpop.f32.mrf.mxu0 }
 0x450   :  { %v1175_v21 = vpop.f32.mrf.mxu1 }
 0x451   :  { %v1457_v26 = vpack.c.bf16 %v1175_v21, %v1129_v22  ;;  %v3595_v21 = vld [vmem:[#allocation11 + $0xe0] ss:$16 sps:$4 sm:$0xff]  }
 0x452   :  { %v3413_v31 = vpop.f32.mrf.mxu1 }
 0x453   :  { %3467 = vmatprep.mubr.bf16.mxu0 %v1457_v26  ;;  %v3597_v26 = vld [vmem:[#allocation11 + $0xe4] ss:$16 sps:$4 sm:$0xff]   ;;  %v3598_v31 = vld [vmem:[#allocation11 + $0xe8] ss:$16 sps:$4 sm:$0xff]  }
 0x454   :  { %v1178_v33 = vpop.f32.mrf.mxu1  ;;  %1927 = vmatprep.subr.bf16.mxu1 %v3597_v26  ;;  %v3642_v26 = vld [vmem:[#allocation11 + $0xc] ss:$16 sps:$4 sm:$0xff]  }
 0x455   :  { %v3600_v33 = vld [vmem:[#allocation11 + $0xec] ss:$16 sps:$4 sm:$0xff]   ;;  %1928 = vmatpush1.bf16.msra.mxu1 %v3595_v21  ;;  %v3639_v21 = vld [vmem:[#allocation11 + $0x4] ss:$16 sps:$4 sm:$0xff]  }
 0x456   :  { %v3414_v34 = vpop.f32.mrf.mxu1  ;;  %2000 = vmatprep.subr.bf16.mxu0 %v3600_v33  ;;  %v3640_v33 = vld [vmem:[#allocation11 + $0x8] ss:$16 sps:$4 sm:$0xff]  }
 0x458   :  { %v1221_v36 = vpop.f32.mrf.mxu0 }
 0x45a   :  { %v3419_v37 = vpop.f32.mrf.mxu0 }
 0x45c   :  { %v1224_v39 = vpop.f32.mrf.mxu0 }
 0x45e   :  { %v3420_v41 = vpop.f32.mrf.mxu0 }
 0x460   :  { %v1267_v42 = vpop.f32.mrf.mxu1  ;;  %v1313_v43 = vpop.f32.mrf.mxu0 }
 0x461   :  { %v1458_v45 = vpack.c.bf16 %v1267_v42, %v1221_v36 }
 0x462   :  { %v3425_v32 = vpop.f32.mrf.mxu1  ;;  %v3431_v46 = vpop.f32.mrf.mxu0 }
 0x463   :  { %3468 = vmatmul.mubr.bf16.vlgmr.msra.gmra.mxu0 %v1458_v45 }
 0x464   :  { %v1270_v47 = vpop.f32.mrf.mxu1  ;;  %v1316_v48 = vpop.f32.mrf.mxu0  ;;  %2001 = vmatpush1.bf16.msra.mxu0 %v3598_v31  ;;  %v3637_v31 = vld [vmem:[#allocation11] ss:$16 sps:$4 sm:$0xff]  }
 0x466   :  { %v3426_v49 = vpop.f32.mrf.mxu1  ;;  %v3432_v50 = vpop.f32.mrf.mxu0 }
 0x468   :  { %v1359_v52 = vpop.f32.mrf.mxu1  ;;  %v1405_v54 = vpop.f32.mrf.mxu0 }
 0x469   :  { %v1459_v55 = vpack.c.bf16 %v1359_v52, %v1313_v43 }
 0x46a   :  { %v3437_v56 = vpop.f32.mrf.mxu1  ;;  %v3443_v57 = vpop.f32.mrf.mxu0 }
 0x46b   :  { %3471 = vmatprep.mubr.bf16.mxu0 %v1459_v55  ;;  %v3603_v55 = vld [vmem:[#allocation11 + $0xc4] ss:$16 sps:$4 sm:$0xff]   ;;  %v3606_v56 = vld [vmem:[#allocation11 + $0xcc] ss:$16 sps:$4 sm:$0xff]  }
 0x46c   :  { %v1362_v44 = vpop.f32.mrf.mxu1  ;;  %v1408_v58 = vpop.f32.mrf.mxu0  ;;  %1929 = vmatprep.subr.bf16.mxu1 %v3603_v55  ;;  %2002 = vmatprep.subr.bf16.mxu0 %v3606_v56 }
 0x46d   :  { %v3601_v44 = vld [vmem:[#allocation11 + $0xc0] ss:$16 sps:$4 sm:$0xff]   ;;  %v3604_v58 = vld [vmem:[#allocation11 + $0xc8] ss:$16 sps:$4 sm:$0xff]  }
 0x46e   :  { %v3438_v60 = vpop.f32.mrf.mxu1  ;;  %v3444_v61 = vpop.f32.mrf.mxu0  ;;  %1930 = vmatpush1.bf16.msra.mxu1 %v3601_v44  ;;  %2003 = vmatpush1.bf16.msra.mxu0 %v3604_v58 }
 0x470   :  { %v1451_v62 = vpop.f32.mrf.mxu1 }
 0x471   :  { %v1460_v53 = vpack.c.bf16 %v1451_v62, %v1405_v54 }
 0x472   :  { %v3449_v63 = vpop.f32.mrf.mxu1 }
 0x473   :  { %3472 = vmatmul.mubr.bf16.gmra.mxu0 %v1460_v53 }
 0x474   :  { %v1454_v4 = vpop.f32.mrf.mxu1  ;;  %2032 = vmatprep.mubr.bf16.mxu0 %v4059_v0 }
 0x475   :  { %v3609_v4 = vld [vmem:[#allocation11 + $0xa4] ss:$16 sps:$4 sm:$0xff]  }
 0x476   :  { %v3450_v5 = vpop.f32.mrf.mxu1  ;;  %1931 = vmatprep.subr.bf16.mxu1 %v3609_v4 }
 0x477   :  { %v3612_v5 = vld [vmem:[#allocation11 + $0xac] ss:$16 sps:$4 sm:$0xff]  }
 0x478   :  { %2004 = vmatprep.subr.bf16.mxu0 %v3612_v5 }
 0x523   :  { %v3469_v9 = vpop.f32.mrf.mxu0 }
 0x524   :  { %v1568_v13 = vadd.f32 %v3469_v9, %v226_v1  ;;  %v3607_v9 = vld [vmem:[#allocation11 + $0xa0] ss:$16 sps:$4 sm:$0xff]  }
 0x525   :  { %v1559_v10 = vpop.f32.mrf.mxu0  ;;  %1932 = vmatpush1.bf16.msra.mxu1 %v3607_v9 }
 0x526   :  { %v1560_v11 = vadd.f32 %v1559_v10, %v224_v8  ;;  %v3610_v10 = vld [vmem:[#allocation11 + $0xa8] ss:$16 sps:$4 sm:$0xff]  }
 0x527   :  { %v3470_v12 = vpop.f32.mrf.mxu0  ;;  %2005 = vmatpush1.bf16.msra.mxu0 %v3610_v10 }
 0x528   :  { %1590 = vadd.xlane.f32.xlu0 %v1560_v11  ;;  %v1571_v16 = vadd.f32 %v3470_v12, %v227_v59  ;;  %v3613_v59 = vld [vmem:[#allocation11 + $0x80] ss:$16 sps:$4 sm:$0xff]  }
 0x529   :  { %v1562_v40 = vpop.f32.mrf.mxu0 }
 0x52a   :  { %v1563_v15 = vadd.f32 %v1562_v40, %v225_v38  ;;  %v3615_v40 = vld [vmem:[#allocation11 + $0x84] ss:$16 sps:$4 sm:$0xff]  }
 0x52b   :  { %1933 = vmatprep.subr.bf16.mxu1 %v3615_v40 }
 0x52c   :  { %1592 = vadd.xlane.f32.xlu1 %v1563_v15  ;;  %1594 = vadd.xlane.f32.xlu0 %v1568_v13 }
 0x52d   :  { %1934 = vmatpush1.bf16.msra.mxu1 %v3613_v59 }
 0x530   :  { %1596 = vadd.xlane.f32.xlu1 %v1571_v16 }
 0x533   :  { %v3473_v17 = vpop.f32.mrf.mxu0 }
 0x534   :  { %v1584_v22 = vadd.f32 %v3473_v17, %v230_v18  ;;  %v3621_v17 = vld [vmem:[#allocation11 + $0x64] ss:$16 sps:$4 sm:$0xff]   ;;  %v3624_v18 = vld [vmem:[#allocation11 + $0x6c] ss:$16 sps:$4 sm:$0xff]  }
 0x535   :  { %v1575_v7 = vpop.f32.mrf.mxu0  ;;  %1935 = vmatprep.subr.bf16.mxu1 %v3621_v17 }
 0x536   :  { %v1576_v25 = vadd.f32 %v1575_v7, %v228_v51  ;;  %v3619_v51 = vld [vmem:[#allocation11 + $0x60] ss:$16 sps:$4 sm:$0xff]   ;;  %v3622_v7 = vld [vmem:[#allocation11 + $0x68] ss:$16 sps:$4 sm:$0xff]  }
 0x537   :  { %v3474_v3 = vpop.f32.mrf.mxu0  ;;  %1936 = vmatpush1.bf16.msra.mxu1 %v3619_v51 }
 0x538   :  { %1598 = vadd.xlane.f32.xlu0 %v1576_v25  ;;  %v4395_v20 = vadd.f32 %v3474_v3, %v231_v23  ;;  %v3625_v3 = vld [vmem:[#allocation11 + $0x40] ss:$16 sps:$4 sm:$0xff]   ;;  %v3636_v23 = vld [vmem:[#allocation11 + $0x2c] ss:$16 sps:$4 sm:$0xff]  }
 0x539   :  { %v1578_v19 = vpop.f32.mrf.mxu0 }
 0x53a   :  { %v1579_v24 = vadd.f32 %v1578_v19, %v229_v2  ;;  %v3630_v2 = vld [vmem:[#allocation11 + $0x4c] ss:$16 sps:$4 sm:$0xff]   ;;  %v3628_v19 = vld [vmem:[#allocation11 + $0x48] ss:$16 sps:$4 sm:$0xff]  }
 0x53c   :  { %1600 = vadd.xlane.f32.xlu1 %v1579_v24  ;;  %1602 = vadd.xlane.f32.xlu0 %v1584_v22 }
 0x540   :  { %1604 = vadd.xlane.f32.xlu1 %v4395_v20 }
 0x5b1   :  { %v1591_v27 = vpop.xlane.xlu0 %1590 }
 0x5b2   :  { %v1607_v34 = vmul.f32 0.0078125, %v1591_v27  ;;  %v3643_v27 = vld [vmem:[#allocation14 + $0x78] sm:$0xff]  }
 0x5b4   :  { %v4398_v36 = vsub.f32 %v1560_v11, %v1607_v34  ;;  %v3644_v34 = vld [vmem:[#allocation14 + $0xf8] sm:$0xff]  }
 0x5b5   :  { %v1593_v28 = vpop.xlane.xlu1 %1592  ;;  %v1595_v37 = vpop.xlane.xlu0 %1594 }
 0x5b6   :  { %v1608_v39 = vmul.f32 0.0078125, %v1593_v28  ;;  %v1609_v41 = vmul.f32 0.0078125, %v1595_v37  ;;  %v1623_v42 = vmul.f32 %v4398_v36, %v4398_v36 }
 0x5b8   :  { %v4402_v43 = vsub.f32 %v1563_v15, %v1608_v39  ;;  %v4404_v45 = vsub.f32 %v1568_v13, %v1609_v41  ;;  %1631 = vadd.xlane.f32.xlu0 %v1623_v42  ;;  %v3618_v13 = vld [vmem:[#allocation11 + $0x8c] ss:$16 sps:$4 sm:$0xff]   ;;  %v3616_v15 = vld [vmem:[#allocation11 + $0x88] ss:$16 sps:$4 sm:$0xff]  }
 0x5b9   :  { %v1597_v32 = vpop.xlane.xlu1 %1596  ;;  %2006 = vmatprep.subr.bf16.mxu0 %v3618_v13 }
 0x5ba   :  { %v1610_v46 = vmul.f32 0.0078125, %v1597_v32  ;;  %v1624_v47 = vmul.f32 %v4402_v43, %v4402_v43  ;;  %v1625_v48 = vmul.f32 %v4404_v45, %v4404_v45  ;;  %2007 = vmatpush1.bf16.msra.mxu0 %v3616_v15 }
 0x5bb   :  { %2008 = vmatprep.subr.bf16.mxu0 %v3624_v18 }
 0x5bc   :  { %v4410_v49 = vsub.f32 %v1571_v16, %v1610_v46  ;;  %1633 = vadd.xlane.f32.xlu1 %v1624_v47  ;;  %1635 = vadd.xlane.f32.xlu0 %v1625_v48 }
 0x5be   :  { %v1626_v50 = vmul.f32 %v4410_v49, %v4410_v49  ;;  %2009 = vmatpush1.bf16.msra.mxu0 %v3622_v7 }
 0x5bf   :  { %2010 = vmatprep.subr.bf16.mxu0 %v3630_v2  ;;  %v3646_v2 = vld [vmem:[#allocation14 + $0xb8] sm:$0xff]  }
 0x5c0   :  { %1637 = vadd.xlane.f32.xlu1 %v1626_v50 }
 0x5c1   :  { %v1599_v52 = vpop.xlane.xlu0 %1598 }
 0x5c2   :  { %v1611_v54 = vmul.f32 0.0078125, %v1599_v52  ;;  %2011 = vmatpush1.bf16.msra.mxu0 %v3628_v19  ;;  %v3648_v19 = vld [vmem:[#allocation14 + $0xf0] sm:$0xff]  }
 0x5c3   :  { %2012 = vmatprep.subr.bf16.mxu0 %v3636_v23  ;;  %v3650_v23 = vld [vmem:[#allocation14 + $0xb0] sm:$0xff]  }
 0x5c4   :  { %v4414_v57 = vsub.f32 %v1576_v25, %v1611_v54  ;;  %v3627_v25 = vld [vmem:[#allocation11 + $0x44] ss:$16 sps:$4 sm:$0xff]  }
 0x5c5   :  { %v1601_v60 = vpop.xlane.xlu1 %1600  ;;  %v1603_v61 = vpop.xlane.xlu0 %1602  ;;  %1937 = vmatprep.subr.bf16.mxu1 %v3627_v25  ;;  %v3645_v25 = vld [vmem:[#allocation14 + $0x38] sm:$0xff]  }
 0x5c6   :  { %v1612_v62 = vmul.f32 0.0078125, %v1601_v60  ;;  %v1613_v53 = vmul.f32 0.0078125, %v1603_v61  ;;  %v1627_v63 = vmul.f32 %v4414_v57, %v4414_v57  ;;  %1938 = vmatpush1.bf16.msra.mxu1 %v3625_v3  ;;  %v4432_v61 = vld [vmem:[#allocation8] ss:$0 sm:$0xff]  ;;  %v3647_v3 = vld [vmem:[#allocation14 + $0x70] sm:$0xff]  }
 0x5c8   :  { %v4418_v6 = vsub.f32 %v1579_v24, %v1612_v62  ;;  %v4420_v8 = vsub.f32 %v1584_v22, %v1613_v53  ;;  %1639 = vadd.xlane.f32.xlu0 %v1627_v63  ;;  %v3633_v22 = vld [vmem:[#allocation11 + $0x24] ss:$16 sps:$4 sm:$0xff]   ;;  %v3631_v24 = vld [vmem:[#allocation11 + $0x20] ss:$16 sps:$4 sm:$0xff]  }
 0x5c9   :  { %v1605_v1 = vpop.xlane.xlu1 %1604  ;;  %1939 = vmatprep.subr.bf16.mxu1 %v3633_v22  ;;  %v3649_v22 = vld [vmem:[#allocation14 + $0x30] sm:$0xff]  }
 0x5ca   :  { %v1614_v11 = vmul.f32 0.0078125, %v1605_v1  ;;  %v1628_v38 = vmul.f32 %v4418_v6, %v4418_v6  ;;  %v1629_v12 = vmul.f32 %v4420_v8, %v4420_v8  ;;  %1940 = vmatpush1.bf16.msra.mxu1 %v3631_v24 }
 0x5cb   :  { %1941 = vmatprep.subr.bf16.mxu1 %v3639_v21  ;;  %v3652_v21 = vld [vmem:[#allocation14 + $0xe8] sm:$0xff]  }
 0x5cc   :  { %v4427_v14 = vsub.f32 %v4395_v20, %v1614_v11  ;;  %1641 = vadd.xlane.f32.xlu1 %v1628_v38  ;;  %1643 = vadd.xlane.f32.xlu0 %v1629_v12  ;;  %v3634_v20 = vld [vmem:[#allocation11 + $0x28] ss:$16 sps:$4 sm:$0xff]   ;;  %v4436_v12 = vld [vmem:[#allocation10] ss:$0 sm:$0xff] }
 0x5cd   :  { %2013 = vmatpush1.bf16.msra.mxu0 %v3634_v20  ;;  %v3651_v20 = vld [vmem:[#allocation14 + $0x68] sm:$0xff]  }
 0x5ce   :  { %v1630_v16 = vmul.f32 %v4427_v14, %v4427_v14  ;;  %2014 = vmatprep.subr.bf16.mxu0 %v3642_v26  ;;  %1942 = vmatpush1.bf16.msra.mxu1 %v3637_v31 }
 0x5cf   :  { %3228 = vmatprep.subr.bf16.mxu1 %v3643_v27  ;;  %v3653_v27 = vld [vmem:[#allocation14 + $0x28] sm:$0xff]  }
 0x5d0   :  { %1645 = vadd.xlane.f32.xlu1 %v1630_v16 }
 0x5d1   :  { %2015 = vmatpush1.bf16.msra.mxu0 %v3640_v33 }
 0x5d2   :  { %3268 = vmatprep.subr.bf16.mxu0 %v3644_v34  ;;  %v3654_v34 = vld [vmem:[#allocation14 + $0xa8] sm:$0xff]  }
 0x641   :  { %v1632_v28 = vpop.xlane.xlu0 %1631 }
 0x642   :  { %v1647_v37 = vmul.f32 0.0078125, %v1632_v28 }
 0x644   :  { %v1655_v39 = vadd.f32 1e-12, %v1647_v37  ;;  %v3655_v37 = vld [vmem:[#allocation14 + $0x60] sm:$0xff]  }
 0x645   :  { %v1634_v41 = vpop.xlane.xlu1 %1633  ;;  %v1636_v42 = vpop.xlane.xlu0 %1635 }
 0x646   :  { %3731 = vrsqrt.f32 %v1655_v39  ;;  %v1648_v32 = vmul.f32 0.0078125, %v1634_v41  ;;  %v1649_v46 = vmul.f32 0.0078125, %v1636_v42  ;;  %v3656_v39 = vld [vmem:[#allocation14 + $0xe0] sm:$0xff]  }
 0x648   :  { %v1656_v47 = vadd.f32 1e-12, %v1648_v32  ;;  %v1657_v48 = vadd.f32 1e-12, %v1649_v46  ;;  %v3657_v46 = vld [vmem:[#allocation14 + $0x20] sm:$0xff]  }
 0x649   :  { %v1638_v50 = vpop.xlane.xlu1 %1637 }
 0x64a   :  { %3733 = vrsqrt.f32 %v1656_v47  ;;  %v1650_v52 = vmul.f32 0.0078125, %v1638_v50  ;;  %v3658_v47 = vld [vmem:[#allocation14 + $0xa0] sm:$0xff]   ;;  %v3659_v50 = vld [vmem:[#allocation14 + $0x58] sm:$0xff]  }
 0x64b   :  { %3735 = vrsqrt.f32 %v1657_v48 }
 0x64c   :  { %v1658_v54 = vadd.f32 1e-12, %v1650_v52  ;;  %v3660_v52 = vld [vmem:[#allocation14 + $0xd8] sm:$0xff]  }
 0x64e   :  { %3737 = vrsqrt.f32 %v1658_v54 }
 0x651   :  { %v1640_v55 = vpop.xlane.xlu0 %1639 }
 0x652   :  { %v1651_v56 = vmul.f32 0.0078125, %v1640_v55 }
 0x653   :  { %v3732_v44 = vpop.eup %3731 }
 0x654   :  { %v1659_v58 = vadd.f32 1e-12, %v1651_v56  ;;  %v1671_v60 = vmul.f32 %v3732_v44, %v4398_v36 }
 0x655   :  { %v1642_v62 = vpop.xlane.xlu1 %1641  ;;  %v1644_v53 = vpop.xlane.xlu0 %1643 }
 0x656   :  { %3739 = vrsqrt.f32 %v1659_v58  ;;  %v1652_v63 = vmul.f32 0.0078125, %v1642_v62  ;;  %v1653_v4 = vmul.f32 0.0078125, %v1644_v53  ;;  %v1686_v9 = vmul.f32 %v4432_v61, %v1671_v60  ;;  %v3661_v60 = vld [vmem:[#allocation14 + $0x18] sm:$0xff]  }
 0x657   :  { %v3734_v5 = vpop.eup %3733  ;;  %v3662_v62 = vld [vmem:[#allocation14 + $0x98] sm:$0xff]  }
 0x658   :  { %v3736_v10 = vpop.eup %3735  ;;  %v1660_v1 = vadd.f32 1e-12, %v1652_v63  ;;  %v1661_v11 = vadd.f32 1e-12, %v1653_v4  ;;  %v1672_v38 = vmul.f32 %v3734_v5, %v4402_v43  ;;  %v4440_v15 = vadd.f32 %v4436_v12, %v1686_v9  ;;  %v3663_v4 = vld [vmem:[#allocation14 + $0x50] sm:$0xff]  }
 0x659   :  { %v1646_v40 = vpop.xlane.xlu1 %1645  ;;  %v1673_v16 = vmul.f32 %v3736_v10, %v4404_v45  ;;  %v3664_v5 = vld [vmem:[#allocation14 + $0xd0] sm:$0xff]   ;;  %v3668_v10 = vld [vmem:[#allocation14 + $0xc8] sm:$0xff]  }
 0x65a   :  { %3741 = vrsqrt.f32 %v1660_v1  ;;  %v1654_v36 = vmul.f32 0.0078125, %v1646_v40  ;;  %v1687_v13 = vmul.f32 %v4432_v61, %v1672_v38  ;;  %v3666_v9 = vld [vmem:[#allocation14 + $0x90] sm:$0xff]   ;;  %v3669_v1 = vld [vmem:[#allocation14 + $0x8] sm:$0xff]   ;;  %v3671_v38 = vld [vmem:[#allocation14 + $0x40] sm:$0xff]  }
 0x65b   :  { %v3738_v59 = vpop.eup %3737  ;;  %3743 = vrsqrt.f32 %v1661_v11  ;;  %v1688_v45 = vmul.f32 %v4432_v61, %v1673_v16  ;;  %v3670_v11 = vld [vmem:[#allocation14 + $0x88] sm:$0xff]   ;;  %v3673_v40 = vld [vmem:[#allocation14] sm:$0xff]   ;;  %v1757_v16 = vsub.s32 2, %v4280_v30 }
 0x65c   :  { %v1662_v51 = vadd.f32 1e-12, %v1654_v36  ;;  %v4444_v17 = vadd.f32 %v4436_v12, %v1687_v13  ;;  %v1674_v43 = vmul.f32 %v3738_v59, %v4410_v49  ;;  %v3674_v36 = vld [vmem:[#allocation14 + $0x80] sm:$0xff]   ;;  %v1753_v13 = vsub.s32 1, %v4280_v30 }
 0x65d   :  { %v4457_v26 = vadd.f32 %v4436_v12, %v1688_v45  ;;  %v1761_v59 = vsub.s32 3, %v4280_v30 }
 0x65e   :  { %3745 = vrsqrt.f32 %v1662_v51  ;;  %v1709_v7 = vpack.c.bf16 %v4444_v17, %v4440_v15  ;;  %v1689_v18 = vmul.f32 %v4432_v61, %v1674_v43  ;;  %v1745_v51 = vld [vmem:[#allocation13] sm:$0xf] }
 0x660   :  { %1960 = vmatmul.mubr.bf16.vlgmr.msra.gmra.mxu1 %v1709_v7  ;;  %2033 = vmatmul.mubr.bf16.vlgmr.msra.gmra.mxu0 %v1709_v7  ;;  %v4454_v49 = vadd.f32 %v4436_v12, %v1689_v18  ;;  %v4494_v18 = vrot.slane %v1745_v51, %v1753_v13 }
 0x661   :  { %1969 = vmatprep.mubr.bf16.mxu1 %v4059_v0  ;;  %2042 = vmatprep.mubr.bf16.mxu0 %v4059_v0 }
 0x662   :  { %3229 = vmatpush3.bf16.msra.mxu1 %v3645_v25  ;;  %3269 = vmatpush3.bf16.msra.mxu0 %v3646_v2  ;;  %v1710_v33 = vpack.c.bf16 %v4454_v49, %v4457_v26  ;;  %v4496_v25 = vrot.slane %v1745_v51, %v1761_v59  ;;  %v4499_v2 = vrot.slane %v1745_v51, %v4284_v35 }
 0x663   :  { %v3740_v24 = vpop.eup %3739  ;;  %3230 = vmatprep.subr.bf16.mxu1 %v3647_v3  ;;  %3270 = vmatprep.subr.bf16.mxu0 %v3648_v19  ;;  %v4501_v3 = vrot.slane %v1745_v51, %v1757_v16 }
 0x664   :  { %v1675_v31 = vmul.f32 %v3740_v24, %v4414_v57 }
 0x666   :  { %3231 = vmatpush3.bf16.msra.mxu1 %v3649_v22  ;;  %3271 = vmatpush3.bf16.msra.mxu0 %v3650_v23  ;;  %v1690_v42 = vmul.f32 %v4432_v61, %v1675_v31 }
 0x667   :  { %v3742_v28 = vpop.eup %3741  ;;  %3232 = vmatprep.subr.bf16.mxu1 %v3651_v20  ;;  %3272 = vmatprep.subr.bf16.mxu0 %v3652_v21 }
 0x668   :  { %1970 = vmatmul.mubr.bf16.gmra.mxu1 %v1710_v33  ;;  %2043 = vmatmul.mubr.bf16.gmra.mxu0 %v1710_v33  ;;  %v1676_v41 = vmul.f32 %v3742_v28, %v4418_v6  ;;  %v3744_v32 = vpop.eup %3743  ;;  %v4468_v6 = vadd.f32 %v4436_v12, %v1690_v42 }
 0x669   :  { %1979 = vmatprep.mubr.bf16.mxu1 %v4059_v0  ;;  %2052 = vmatprep.mubr.bf16.mxu0 %v4059_v0  ;;  %v1677_v55 = vmul.f32 %v3744_v32, %v4420_v8 }
 0x66a   :  { %v1691_v57 = vmul.f32 %v4432_v61, %v1676_v41  ;;  %3233 = vmatpush3.bf16.msra.mxu1 %v3653_v27  ;;  %3273 = vmatpush3.bf16.msra.mxu0 %v3654_v34 }
 0x66b   :  { %v3746_v48 = vpop.eup %3745  ;;  %3234 = vmatprep.subr.bf16.mxu1 %v3655_v37  ;;  %3274 = vmatprep.subr.bf16.mxu0 %v3656_v39  ;;  %v1692_v53 = vmul.f32 %v4432_v61, %v1677_v55 }
 0x66c   :  { %v4471_v54 = vadd.f32 %v4436_v12, %v1691_v57  ;;  %v1678_v56 = vmul.f32 %v3746_v48, %v4427_v14 }
 0x66d   :  { %v4485_v14 = vadd.f32 %v4436_v12, %v1692_v53 }
 0x66e   :  { %v1711_v44 = vpack.c.bf16 %v4471_v54, %v4468_v6  ;;  %v1693_v58 = vmul.f32 %v4432_v61, %v1678_v56  ;;  %3235 = vmatpush3.bf16.msra.mxu1 %v3657_v46  ;;  %3275 = vmatpush3.bf16.msra.mxu0 %v3658_v47  ;;  %v3665_v61 = vld [vmem:[#allocation14 + $0x10] sm:$0xff]  }
 0x66f   :  { %3236 = vmatprep.subr.bf16.mxu1 %v3659_v50  ;;  %3276 = vmatprep.subr.bf16.mxu0 %v3660_v52 }
 0x670   :  { %1980 = vmatmul.mubr.bf16.gmra.mxu1 %v1711_v44  ;;  %2053 = vmatmul.mubr.bf16.gmra.mxu0 %v1711_v44  ;;  %v4482_v8 = vadd.f32 %v4436_v12, %v1693_v58  ;;  %v3672_v12 = vld [vmem:[#allocation14 + $0xc0] sm:$0xff]  }
 0x671   :  { %1989 = vmatprep.mubr.bf16.mxu1 %v4059_v0  ;;  %2062 = vmatprep.mubr.bf16.mxu0 %v4059_v0  ;;  %v3667_v0 = vld [vmem:[#allocation14 + $0x48] sm:$0xff]  }
 0x672   :  { %3237 = vmatpush3.bf16.msra.mxu1 %v3661_v60  ;;  %3277 = vmatpush3.bf16.msra.mxu0 %v3662_v62  ;;  %v1712_v63 = vpack.c.bf16 %v4482_v8, %v4485_v14 }
 0x673   :  { %3238 = vmatprep.subr.bf16.mxu1 %v3663_v4  ;;  %3278 = vmatprep.subr.bf16.mxu0 %v3664_v5 }
 0x676   :  { %3239 = vmatpush3.bf16.msra.mxu1 %v3665_v61  ;;  %3279 = vmatpush3.bf16.msra.mxu0 %v3666_v9 }
 0x677   :  { %3240 = vmatprep.subr.bf16.mxu1 %v3667_v0  ;;  %3280 = vmatprep.subr.bf16.mxu0 %v3668_v10 }
 0x678   :  { %1990 = vmatmul.mubr.bf16.gmra.mxu1 %v1712_v63  ;;  %2063 = vmatmul.mubr.bf16.gmra.mxu0 %v1712_v63 }
 0x67a   :  { %3241 = vmatpush3.bf16.msra.mxu1 %v3669_v1  ;;  %3281 = vmatpush3.bf16.msra.mxu0 %v3670_v11 }
 0x67b   :  { %3242 = vmatprep.subr.bf16.mxu1 %v3671_v38  ;;  %3282 = vmatprep.subr.bf16.mxu0 %v3672_v12 }
 0x67e   :  { %3243 = vmatpush3.bf16.msra.mxu1 %v3673_v40  ;;  %3283 = vmatpush3.bf16.msra.mxu0 %v3674_v36 }
 0x67f   :  { %3475 = vmatprep.subr.bf16.mxu1 %v4060_v29  ;;  %3495 = vmatprep.subr.bf16.mxu0 %v4060_v29 }
 0x720   :  { %v1961_v43 = vpop.f32.mrf.mxu1  ;;  %v2034_v7 = vpop.f32.mrf.mxu0 }
 0x721   :  { %v1962_v31 = vadd.f32 %v1961_v43, %v4499_v2  ;;  %v2035_v33 = vadd.f32 %v2034_v7, %v4501_v3 }
 0x722   :  { %v1963_v19 = vpop.f32.mrf.mxu1  ;;  %v2036_v45 = vpop.f32.mrf.mxu0 }
 0x723   :  { %v1964_v24 = vadd.f32 %v1963_v19, %v4494_v18  ;;  %v2037_v30 = vadd.f32 %v2036_v45, %v4496_v25  ;;  %v2073_v48 = vmax.f32 %v1962_v31, 0.0  ;;  %v2075_v50 = vmax.f32 %v2035_v33, 0.0 }
 0x724   :  { %v1965_v22 = vpop.f32.mrf.mxu1  ;;  %v2038_v23 = vpop.f32.mrf.mxu0 }
 0x725   :  { %v1966_v20 = vadd.f32 %v1965_v22, %v4499_v2  ;;  %v2039_v21 = vadd.f32 %v2038_v23, %v4501_v3  ;;  %v2074_v32 = vmax.f32 %v1964_v24, 0.0  ;;  %v2076_v57 = vmax.f32 %v2037_v30, 0.0 }
 0x726   :  { %v1967_v35 = vpop.f32.mrf.mxu1  ;;  %v2040_v27 = vpop.f32.mrf.mxu0 }
 0x727   :  { %v1968_v34 = vadd.f32 %v1967_v35, %v4494_v18  ;;  %v2041_v28 = vadd.f32 %v2040_v27, %v4496_v25  ;;  %v2077_v37 = vmax.f32 %v1966_v20, 0.0  ;;  %v2079_v39 = vmax.f32 %v2039_v21, 0.0 }
 0x728   :  { %v1971_v41 = vpop.f32.mrf.mxu1  ;;  %v2044_v42 = vpop.f32.mrf.mxu0 }
 0x729   :  { %v2078_v46 = vmax.f32 %v1968_v34, 0.0  ;;  %v2080_v47 = vmax.f32 %v2041_v28, 0.0  ;;  %v2105_v58 = vpack.c.bf16 %v2077_v37, %v2073_v48  ;;  %v2107_v60 = vpack.c.bf16 %v2079_v39, %v2075_v50 }
 0x72a   :  { %v1973_v52 = vpop.f32.mrf.mxu1  ;;  %v2046_v55 = vpop.f32.mrf.mxu0  ;;  %v1972_v9 = vadd.f32 %v1971_v41, %v4499_v2  ;;  %v2045_v0 = vadd.f32 %v2044_v42, %v4501_v3 }
 0x72b   :  { %v2106_v56 = vpack.c.bf16 %v2078_v46, %v2074_v32  ;;  %v2108_v44 = vpack.c.bf16 %v2080_v47, %v2076_v57  ;;  %v1974_v62 = vadd.f32 %v1973_v52, %v4494_v18  ;;  %v2047_v4 = vadd.f32 %v2046_v55, %v4496_v25 }
 0x72c   :  { %v1975_v53 = vpop.f32.mrf.mxu1  ;;  %v2048_v63 = vpop.f32.mrf.mxu0  ;;  %v2081_v7 = vmax.f32 %v1972_v9, 0.0  ;;  %v2083_v19 = vmax.f32 %v2045_v0, 0.0 }
 0x72d   :  { %v1976_v5 = vadd.f32 %v1975_v53, %v4499_v2  ;;  %v2049_v61 = vadd.f32 %v2048_v63, %v4501_v3  ;;  %2416 = vmatprep.mubr.bf16.mxu1 %v2106_v56  ;;  %2481 = vmatprep.mubr.bf16.mxu0 %v2108_v44  ;;  %v2082_v59 = vmax.f32 %v1974_v62, 0.0  ;;  %v2084_v16 = vmax.f32 %v2047_v4, 0.0 }
 0x72e   :  { %v1977_v10 = vpop.f32.mrf.mxu1  ;;  %v2050_v1 = vpop.f32.mrf.mxu0  ;;  %2417 = vmatmul.mubr.bf16.vlgmr.msra.gmra.mxu1 %v2105_v58  ;;  %2482 = vmatmul.mubr.bf16.vlgmr.msra.gmra.mxu0 %v2107_v60 }
 0x72f   :  { %v1978_v11 = vadd.f32 %v1977_v10, %v4494_v18  ;;  %v2051_v38 = vadd.f32 %v2050_v1, %v4496_v25  ;;  %v2085_v12 = vmax.f32 %v1976_v5, 0.0  ;;  %v2087_v40 = vmax.f32 %v2049_v61, 0.0 }
 0x730   :  { %v1981_v36 = vpop.f32.mrf.mxu1  ;;  %v2054_v13 = vpop.f32.mrf.mxu0 }
 0x731   :  { %v2086_v51 = vmax.f32 %v1978_v11, 0.0  ;;  %v2088_v43 = vmax.f32 %v2051_v38, 0.0  ;;  %v2109_v30 = vpack.c.bf16 %v2085_v12, %v2081_v7  ;;  %v2111_v20 = vpack.c.bf16 %v2087_v40, %v2083_v19 }
 0x732   :  { %v1983_v45 = vpop.f32.mrf.mxu1  ;;  %v2056_v22 = vpop.f32.mrf.mxu0  ;;  %v1982_v28 = vadd.f32 %v1981_v36, %v4499_v2  ;;  %v2055_v37 = vadd.f32 %v2054_v13, %v4501_v3 }
 0x733   :  { %v2110_v23 = vpack.c.bf16 %v2086_v51, %v2082_v59  ;;  %v2112_v24 = vpack.c.bf16 %v2088_v43, %v2084_v16  ;;  %v1984_v21 = vadd.f32 %v1983_v45, %v4494_v18  ;;  %v2057_v35 = vadd.f32 %v2056_v22, %v4496_v25 }
 0x734   :  { %v1985_v31 = vpop.f32.mrf.mxu1  ;;  %v2058_v33 = vpop.f32.mrf.mxu0  ;;  %v2089_v44 = vmax.f32 %v1982_v28, 0.0  ;;  %v2091_v58 = vmax.f32 %v2055_v37, 0.0 }
 0x735   :  { %v1986_v27 = vadd.f32 %v1985_v31, %v4499_v2  ;;  %v2059_v34 = vadd.f32 %v2058_v33, %v4501_v3  ;;  %2424 = vmatprep.mubr.bf16.mxu1 %v2110_v23  ;;  %2489 = vmatprep.mubr.bf16.mxu0 %v2112_v24  ;;  %v2090_v50 = vmax.f32 %v1984_v21, 0.0  ;;  %v2092_v52 = vmax.f32 %v2057_v35, 0.0 }
 0x736   :  { %v1987_v39 = vpop.f32.mrf.mxu1  ;;  %v2060_v41 = vpop.f32.mrf.mxu0  ;;  %2425 = vmatmul.mubr.bf16.gmra.mxu1 %v2109_v30  ;;  %2490 = vmatmul.mubr.bf16.gmra.mxu0 %v2111_v20  ;;  %v4539_v20 = vld [vmem:[#allocation16] ss:$0 sm:$0xff] }
 0x737   :  { %v1988_v42 = vadd.f32 %v1987_v39, %v4494_v18  ;;  %v2061_v32 = vadd.f32 %v2060_v41, %v4496_v25  ;;  %v2093_v57 = vmax.f32 %v1986_v27, 0.0  ;;  %v2095_v46 = vmax.f32 %v2059_v34, 0.0 }
 0x738   :  { %v1991_v47 = vpop.f32.mrf.mxu1  ;;  %v2064_v48 = vpop.f32.mrf.mxu0 }
 0x739   :  { %v2094_v55 = vmax.f32 %v1988_v42, 0.0  ;;  %v2096_v56 = vmax.f32 %v2061_v32, 0.0  ;;  %v2113_v4 = vpack.c.bf16 %v2093_v57, %v2089_v44  ;;  %v2115_v5 = vpack.c.bf16 %v2095_v46, %v2091_v58 }
 0x73a   :  { %v1993_v60 = vpop.f32.mrf.mxu1  ;;  %v2066_v62 = vpop.f32.mrf.mxu0  ;;  %v1992_v38 = vadd.f32 %v1991_v47, %v4499_v2  ;;  %v2065_v12 = vadd.f32 %v2064_v48, %v4501_v3 }
 0x73b   :  { %v2114_v53 = vpack.c.bf16 %v2094_v55, %v2090_v50  ;;  %v2116_v63 = vpack.c.bf16 %v2096_v56, %v2092_v52  ;;  %v1994_v61 = vadd.f32 %v1993_v60, %v4494_v18  ;;  %v2067_v10 = vadd.f32 %v2066_v62, %v4496_v25 }
 0x73c   :  { %v1995_v9 = vpop.f32.mrf.mxu1  ;;  %v2068_v0 = vpop.f32.mrf.mxu0  ;;  %v2097_v22 = vmax.f32 %v1992_v38, 0.0  ;;  %v2099_v23 = vmax.f32 %v2065_v12, 0.0 }
 0x73d   :  { %v1996_v1 = vadd.f32 %v1995_v9, %v4499_v2  ;;  %v2069_v11 = vadd.f32 %v2068_v0, %v4501_v3  ;;  %2432 = vmatprep.mubr.bf16.mxu1 %v2114_v53  ;;  %2497 = vmatprep.mubr.bf16.mxu0 %v2116_v63  ;;  %v2098_v43 = vmax.f32 %v1994_v61, 0.0  ;;  %v2100_v7 = vmax.f32 %v2067_v10, 0.0 }
 0x73e   :  { %v1997_v40 = vpop.f32.mrf.mxu1  ;;  %v2070_v36 = vpop.f32.mrf.mxu0  ;;  %2433 = vmatmul.mubr.bf16.gmra.mxu1 %v2113_v4  ;;  %2498 = vmatmul.mubr.bf16.gmra.mxu0 %v2115_v5 }
 0x73f   :  { %v1998_v13 = vadd.f32 %v1997_v40, %v4494_v18  ;;  %v2071_v59 = vadd.f32 %v2070_v36, %v4496_v25  ;;  %v2101_v16 = vmax.f32 %v1996_v1, 0.0  ;;  %v2103_v51 = vmax.f32 %v2069_v11, 0.0 }
 0x741   :  { %v2102_v19 = vmax.f32 %v1998_v13, 0.0  ;;  %v2104_v45 = vmax.f32 %v2071_v59, 0.0  ;;  %v2117_v30 = vpack.c.bf16 %v2101_v16, %v2097_v22  ;;  %v2119_v3 = vpack.c.bf16 %v2103_v51, %v2099_v23 }
 0x743   :  { %v2118_v24 = vpack.c.bf16 %v2102_v19, %v2098_v43  ;;  %v2120_v2 = vpack.c.bf16 %v2104_v45, %v2100_v7 }
 0x745   :  { %2440 = vmatprep.mubr.bf16.mxu1 %v2118_v24  ;;  %2505 = vmatprep.mubr.bf16.mxu0 %v2120_v2 }
 0x746   :  { %2441 = vmatmul.mubr.bf16.gmra.mxu1 %v2117_v30  ;;  %2506 = vmatmul.mubr.bf16.gmra.mxu0 %v2119_v3 }
 0x747   :  { %3491 = vmatprep.mubr.msk.bf16.mxu1 %vm4061_vm0, %v4060_v29  ;;  %3511 = vmatprep.mubr.msk.bf16.mxu0 %vm4061_vm0, %v4060_v29 }
 0x7ee   :  { %v3244_v18 = vpop.f32.mrf.mxu1  ;;  %v3284_v25 = vpop.f32.mrf.mxu0 }
 0x7f0   :  { %v3245_v21 = vpop.f32.mrf.mxu1  ;;  %v3285_v31 = vpop.f32.mrf.mxu0 }
 0x7f1   :  { %v3246_v33 = vadd.f32 %v3245_v21, %v3244_v18  ;;  %v3286_v28 = vadd.f32 %v3285_v31, %v3284_v25 }
 0x7f2   :  { %v3247_v35 = vpop.f32.mrf.mxu1  ;;  %v3287_v27 = vpop.f32.mrf.mxu0 }
 0x7f3   :  { %v2419_v34 = vadd.f32 %v3246_v33, %v4539_v20 }
 0x7f4   :  { %v3248_v37 = vpop.f32.mrf.mxu1  ;;  %v3288_v39 = vpop.f32.mrf.mxu0 }
 0x7f5   :  { %v2484_v41 = vadd.f32 %v3286_v28, %v2419_v34  ;;  %v3249_v42 = vadd.f32 %v3248_v37, %v3247_v35  ;;  %v3289_v47 = vadd.f32 %v3288_v39, %v3287_v27 }
 0x7f6   :  { %v3250_v32 = vpop.f32.mrf.mxu1  ;;  %v3290_v57 = vpop.f32.mrf.mxu0 }
 0x7f7   :  { %v2422_v46 = vadd.f32 %v3249_v42, %v4539_v20  ;;  %v4544_v48 = vadd.f32 %v2484_v41, %v4440_v15 }
 0x7f8   :  { %v3251_v50 = vpop.f32.mrf.mxu1  ;;  %v3291_v52 = vpop.f32.mrf.mxu0 }
 0x7f9   :  { %v2487_v55 = vadd.f32 %v3289_v47, %v2422_v46  ;;  %v3252_v56 = vadd.f32 %v3251_v50, %v3250_v32  ;;  %2522 = vadd.xlane.f32.xlu0 %v4544_v48  ;;  %v3292_v62 = vadd.f32 %v3291_v52, %v3290_v57 }
 0x7fa   :  { %v3253_v44 = vpop.f32.mrf.mxu1  ;;  %v3293_v58 = vpop.f32.mrf.mxu0 }
 0x7fb   :  { %v2427_v60 = vadd.f32 %v3252_v56, %v4539_v20  ;;  %v2515_v53 = vadd.f32 %v2487_v55, %v4444_v17 }
 0x7fc   :  { %v3254_v63 = vpop.f32.mrf.mxu1  ;;  %v3294_v4 = vpop.f32.mrf.mxu0 }
 0x7fd   :  { %v2492_v5 = vadd.f32 %v3292_v62, %v2427_v60  ;;  %v3255_v61 = vadd.f32 %v3254_v63, %v3253_v44  ;;  %2524 = vadd.xlane.f32.xlu0 %v2515_v53  ;;  %v3295_v10 = vadd.f32 %v3294_v4, %v3293_v58 }
 0x7fe   :  { %v3256_v15 = vpop.f32.mrf.mxu1  ;;  %v3296_v9 = vpop.f32.mrf.mxu0 }
 0x7ff   :  { %v2430_v0 = vadd.f32 %v3255_v61, %v4539_v20  ;;  %v2516_v1 = vadd.f32 %v2492_v5, %v4457_v26 }
 0x800   :  { %v3257_v11 = vpop.f32.mrf.mxu1  ;;  %v3297_v38 = vpop.f32.mrf.mxu0 }
 0x801   :  { %v2495_v12 = vadd.f32 %v3295_v10, %v2430_v0  ;;  %v3258_v40 = vadd.f32 %v3257_v11, %v3256_v15  ;;  %2526 = vadd.xlane.f32.xlu1 %v2516_v1  ;;  %v3298_v59 = vadd.f32 %v3297_v38, %v3296_v9 }
 0x802   :  { %v3259_v36 = vpop.f32.mrf.mxu1  ;;  %v3299_v13 = vpop.f32.mrf.mxu0 }
 0x803   :  { %v2435_v17 = vadd.f32 %v3258_v40, %v4539_v20  ;;  %v2517_v16 = vadd.f32 %v2495_v12, %v4454_v49 }
 0x804   :  { %v3260_v51 = vpop.f32.mrf.mxu1  ;;  %v3300_v43 = vpop.f32.mrf.mxu0 }
 0x805   :  { %v2500_v7 = vadd.f32 %v3298_v59, %v2435_v17  ;;  %v3261_v19 = vadd.f32 %v3260_v51, %v3259_v36  ;;  %2528 = vadd.xlane.f32.xlu1 %v2517_v16  ;;  %v3301_v23 = vadd.f32 %v3300_v43, %v3299_v13  ;;  %v3675_v13 = vld [vmem:[%s4700_s13 + $0x38] sm:$0xff]   ;;  %v3676_v17 = vld [vmem:[%s4700_s13 + $0x30] sm:$0xff]   ;;  %v3677_v59 = vld [vmem:[%s4700_s13 + $0x28] sm:$0xff]  }
 0x806   :  { %v3262_v45 = vpop.f32.mrf.mxu1  ;;  %v3302_v22 = vpop.f32.mrf.mxu0  ;;  %3476 = vmatpush3.bf16.msra.mxu1 %v3675_v13  ;;  %v3679_v51 = vld [vmem:[%s4700_s13 + $0x18] sm:$0xff]   ;;  %v3680_v43 = vld [vmem:[%s4700_s13 + $0x10] sm:$0xff]  }
 0x807   :  { %v2438_v26 = vadd.f32 %v3261_v19, %v4539_v20  ;;  %v2518_v24 = vadd.f32 %v2500_v7, %v4468_v6  ;;  %3477 = vmatprep.subr.bf16.mxu1 %v4060_v29  ;;  %v3681_v7 = vld [vmem:[%s4700_s13 + $0x8] sm:$0xff]   ;;  %v3682_v19 = vld [vmem:[%s4700_s13] sm:$0xff]  }
 0x808   :  { %v3263_v2 = vpop.f32.mrf.mxu1  ;;  %v3303_v30 = vpop.f32.mrf.mxu0 }
 0x809   :  { %v2503_v3 = vadd.f32 %v3301_v23, %v2438_v26  ;;  %v3264_v18 = vadd.f32 %v3263_v2, %v3262_v45  ;;  %2530 = vadd.xlane.f32.xlu0 %v2518_v24  ;;  %v3304_v31 = vadd.f32 %v3303_v30, %v3302_v22  ;;  %v2640_v45 = vld [vmem:[%s4718_s29] sm:$0xff]  ;;  %v3683_v22 = vld [vmem:[%s4703_s16 + $0x38] sm:$0xff]   ;;  %v3684_v26 = vld [vmem:[%s4703_s16 + $0x30] sm:$0xff]  }
 0x80a   :  { %v3265_v25 = vpop.f32.mrf.mxu1  ;;  %v3305_v21 = vpop.f32.mrf.mxu0  ;;  %3478 = vmatpush3.bf16.msra.mxu1 %v3676_v17  ;;  %3496 = vmatpush3.bf16.msra.mxu0 %v3683_v22  ;;  %v3685_v23 = vld [vmem:[%s4703_s16 + $0x28] sm:$0xff]   ;;  %v3687_v2 = vld [vmem:[%s4703_s16 + $0x18] sm:$0xff]   ;;  %v3688_v30 = vld [vmem:[%s4703_s16 + $0x10] sm:$0xff]  }
 0x80b   :  { %v2443_v49 = vadd.f32 %v3264_v18, %v4539_v20  ;;  %v2519_v33 = vadd.f32 %v2503_v3, %v4471_v54  ;;  %3479 = vmatprep.subr.bf16.mxu1 %v4060_v29  ;;  %3497 = vmatprep.subr.bf16.mxu0 %v4060_v29 }
 0x80c   :  { %v3266_v35 = vpop.f32.mrf.mxu1  ;;  %v3306_v27 = vpop.f32.mrf.mxu0 }
 0x80d   :  { %v2508_v34 = vadd.f32 %v3304_v31, %v2443_v49  ;;  %v3267_v28 = vadd.f32 %v3266_v35, %v3265_v25  ;;  %2532 = vadd.xlane.f32.xlu1 %v2519_v33  ;;  %v3307_v6 = vadd.f32 %v3306_v27, %v3305_v21 }
 0x80e   :  { %3480 = vmatpush3.bf16.msra.mxu1 %v3677_v59  ;;  %3498 = vmatpush3.bf16.msra.mxu0 %v3684_v26 }
 0x80f   :  { %v2446_v37 = vadd.f32 %v3267_v28, %v4539_v20  ;;  %v2520_v39 = vadd.f32 %v2508_v34, %v4485_v14  ;;  %3481 = vmatprep.subr.bf16.mxu1 %v4060_v29  ;;  %3499 = vmatprep.subr.bf16.mxu0 %v4060_v29 }
 0x811   :  { %v2511_v41 = vadd.f32 %v3307_v6, %v2446_v37  ;;  %2534 = vadd.xlane.f32.xlu0 %v2520_v39 }
 0x812   :  { %3500 = vmatpush3.bf16.msra.mxu0 %v3685_v23 }
 0x813   :  { %v2521_v42 = vadd.f32 %v2511_v41, %v4482_v8  ;;  %3501 = vmatprep.subr.bf16.mxu0 %v4060_v29 }
 0x815   :  { %2536 = vadd.xlane.f32.xlu1 %v2521_v42 }
 0x882   :  { %v2523_v32 = vpop.xlane.xlu0 %2522 }
 0x883   :  { %v2538_v57 = vmul.f32 0.0078125, %v2523_v32 }
 0x885   :  { %v4561_v46 = vsub.f32 %v4544_v48, %v2538_v57 }
 0x886   :  { %v2525_v54 = vpop.xlane.xlu0 %2524 }
 0x887   :  { %v2539_v47 = vmul.f32 0.0078125, %v2525_v54  ;;  %v2554_v50 = vmul.f32 %v4561_v46, %v4561_v46 }
 0x889   :  { %v4565_v52 = vsub.f32 %v2515_v53, %v2539_v47  ;;  %2562 = vadd.xlane.f32.xlu0 %v2554_v50 }
 0x88a   :  { %v2527_v20 = vpop.xlane.xlu1 %2526 }
 0x88b   :  { %v2540_v14 = vmul.f32 0.0078125, %v2527_v20  ;;  %v2555_v55 = vmul.f32 %v4565_v52, %v4565_v52 }
 0x88d   :  { %v4569_v8 = vsub.f32 %v2516_v1, %v2540_v14  ;;  %2564 = vadd.xlane.f32.xlu0 %v2555_v55 }
 0x88e   :  { %v2529_v56 = vpop.xlane.xlu1 %2528 }
 0x88f   :  { %v2541_v44 = vmul.f32 0.0078125, %v2529_v56  ;;  %v2556_v48 = vmul.f32 %v4569_v8, %v4569_v8 }
 0x891   :  { %v4573_v58 = vsub.f32 %v2517_v16, %v2541_v44  ;;  %2566 = vadd.xlane.f32.xlu1 %v2556_v48  ;;  %v3678_v16 = vld [vmem:[%s4700_s13 + $0x20] sm:$0xff]  }
 0x892   :  { %v2531_v60 = vpop.xlane.xlu0 %2530  ;;  %3482 = vmatpush3.bf16.msra.mxu1 %v3678_v16 }
 0x893   :  { %v2542_v62 = vmul.f32 0.0078125, %v2531_v60  ;;  %v2557_v53 = vmul.f32 %v4573_v58, %v4573_v58  ;;  %3483 = vmatprep.subr.bf16.mxu1 %v4060_v29 }
 0x895   :  { %v4577_v63 = vsub.f32 %v2518_v24, %v2542_v62  ;;  %2568 = vadd.xlane.f32.xlu1 %v2557_v53  ;;  %v3686_v24 = vld [vmem:[%s4703_s16 + $0x20] sm:$0xff]  }
 0x896   :  { %v2533_v4 = vpop.xlane.xlu1 %2532  ;;  %3484 = vmatpush3.bf16.msra.mxu1 %v3679_v51  ;;  %3502 = vmatpush3.bf16.msra.mxu0 %v3686_v24 }
 0x897   :  { %v2543_v5 = vmul.f32 0.0078125, %v2533_v4  ;;  %v2558_v61 = vmul.f32 %v4577_v63, %v4577_v63  ;;  %3485 = vmatprep.subr.bf16.mxu1 %v4060_v29  ;;  %3503 = vmatprep.subr.bf16.mxu0 %v4060_v29 }
 0x899   :  { %v4581_v15 = vsub.f32 %v2519_v33, %v2543_v5  ;;  %2570 = vadd.xlane.f32.xlu0 %v2558_v61  ;;  %v3145_v5 = vld [vmem:[#allocation17] ss:$0 sm:$0xff] }
 0x89a   :  { %v2535_v9 = vpop.xlane.xlu0 %2534  ;;  %3486 = vmatpush3.bf16.msra.mxu1 %v3680_v43  ;;  %3504 = vmatpush3.bf16.msra.mxu0 %v3687_v2 }
 0x89b   :  { %v2544_v0 = vmul.f32 0.0078125, %v2535_v9  ;;  %v2559_v10 = vmul.f32 %v4581_v15, %v4581_v15  ;;  %3487 = vmatprep.subr.bf16.mxu1 %v4060_v29  ;;  %3505 = vmatprep.subr.bf16.mxu0 %v4060_v29 }
 0x89d   :  { %v4585_v1 = vsub.f32 %v2520_v39, %v2544_v0  ;;  %2572 = vadd.xlane.f32.xlu1 %v2559_v10 }
 0x89e   :  { %v2537_v11 = vpop.xlane.xlu1 %2536  ;;  %3488 = vmatpush3.bf16.msra.mxu1 %v3681_v7  ;;  %3506 = vmatpush3.bf16.msra.mxu0 %v3688_v30 }
 0x89f   :  { %v2545_v38 = vmul.f32 0.0078125, %v2537_v11  ;;  %v2560_v12 = vmul.f32 %v4585_v1, %v4585_v1  ;;  %3489 = vmatprep.subr.bf16.mxu1 %v4060_v29  ;;  %3507 = vmatprep.subr.bf16.mxu0 %v4060_v29 }
 0x8a1   :  { %v4589_v40 = vsub.f32 %v2521_v42, %v2545_v38  ;;  %2574 = vadd.xlane.f32.xlu0 %v2560_v12 }
 0x8a2   :  { %3490 = vmatpush3.bf16.msra.mxu1 %v3682_v19 }
 0x8a3   :  { %v2561_v36 = vmul.f32 %v4589_v40, %v4589_v40  ;;  %3515 = vmatprep.subr.bf16.mxu1 %v4060_v29 }
 0x8a5   :  { %2576 = vadd.xlane.f32.xlu1 %v2561_v36 }
 0x8b7   :  { %2668 = vperm.xlu0 %3550, %v2640_v45  }
 0x912   :  { %v2563_v3 = vpop.xlane.xlu0 %2562 }
 0x913   :  { %v2578_v33 = vmul.f32 0.0078125, %v2563_v3 }
 0x915   :  { %v2586_v28 = vadd.f32 1e-12, %v2578_v33 }
 0x916   :  { %v2565_v18 = vpop.xlane.xlu0 %2564 }
 0x917   :  { %v2579_v25 = vmul.f32 0.0078125, %v2565_v18 }
 0x919   :  { %v2587_v49 = vadd.f32 1e-12, %v2579_v25 }
 0x91a   :  { %v2567_v21 = vpop.xlane.xlu1 %2566 }
 0x91b   :  { %v2580_v31 = vmul.f32 0.0078125, %v2567_v21  ;;  %3747 = vrsqrt.f32 %v2587_v49 }
 0x91d   :  { %v2588_v35 = vadd.f32 1e-12, %v2580_v31 }
 0x91e   :  { %v2569_v27 = vpop.xlane.xlu1 %2568 }
 0x91f   :  { %v2581_v34 = vmul.f32 0.0078125, %v2569_v27  ;;  %3749 = vrsqrt.f32 %v2588_v35 }
 0x921   :  { %v2589_v37 = vadd.f32 1e-12, %v2581_v34 }
 0x922   :  { %v2571_v6 = vpop.xlane.xlu0 %2570 }
 0x923   :  { %3751 = vrsqrt.f32 %v2589_v37  ;;  %v2582_v39 = vmul.f32 0.0078125, %v2571_v6 }
 0x924   :  { %3753 = vrsqrt.f32 %v2586_v28 }
 0x925   :  { %v2590_v41 = vadd.f32 1e-12, %v2582_v39 }
 0x926   :  { %v2573_v42 = vpop.xlane.xlu1 %2572 }
 0x927   :  { %3755 = vrsqrt.f32 %v2590_v41  ;;  %v2583_v32 = vmul.f32 0.0078125, %v2573_v42 }
 0x928   :  { %v3748_v50 = vpop.eup %3747 }
 0x929   :  { %v2591_v57 = vadd.f32 1e-12, %v2583_v32  ;;  %v2603_v56 = vmul.f32 %v3748_v50, %v4565_v52  ;;  %v3146_v52 = vld [vmem:[#allocation19] ss:$0 sm:$0xff] }
 0x92a   :  { %v2575_v54 = vpop.xlane.xlu0 %2574 }
 0x92b   :  { %3757 = vrsqrt.f32 %v2591_v57  ;;  %v2584_v47 = vmul.f32 0.0078125, %v2575_v54  ;;  %v2618_v61 = vmul.f32 %v3145_v5, %v2603_v56 }
 0x92c   :  { %v3750_v20 = vpop.eup %3749 }
 0x92d   :  { %v2592_v14 = vadd.f32 1e-12, %v2584_v47  ;;  %v2604_v60 = vmul.f32 %v3750_v20, %v4569_v8  ;;  %v2633_v12 = vadd.f32 %v3146_v52, %v2618_v61 }
 0x92e   :  { %v2577_v55 = vpop.xlane.xlu1 %2576 }
 0x92f   :  { %3759 = vrsqrt.f32 %v2592_v14  ;;  %v2585_v44 = vmul.f32 0.0078125, %v2577_v55  ;;  %v2619_v0 = vmul.f32 %v3145_v5, %v2604_v60  ;;  %v2642_v51 = vpack.c.bf16 %v2633_v12, %v2633_v12  ;;  %v3690_v60 = vld [vmem:[%s4703_s16] sm:$0xff]  }
 0x930   :  { %v3752_v48 = vpop.eup %3751 }
 0x931   :  { %v2605_v62 = vmul.f32 %v3752_v48, %v4573_v58  ;;  %v2593_v53 = vadd.f32 1e-12, %v2585_v44  ;;  %v3754_v4 = vpop.eup %3753  ;;  %v2634_v17 = vadd.f32 %v3146_v52, %v2619_v0  ;;  %v2687_v23 = vunpack.c.l.b16 %v2642_v51  ;;  %v3689_v48 = vld [vmem:[%s4703_s16 + $0x8] sm:$0xff]   ;;  %v3156_v0 = vld [vmem:[%s4702_s15] ss:$0 sm:$0xff] }
 0x932   :  { %v2602_v10 = vmul.f32 %v3754_v4, %v4561_v46  ;;  %3508 = vmatpush3.bf16.msra.mxu0 %v3689_v48  ;;  %v3147_v4 = vld [vmem:[%s4701_s14] ss:$0 sm:$0xff] }
 0x933   :  { %3761 = vrsqrt.f32 %v2593_v53  ;;  %v2620_v11 = vmul.f32 %v3145_v5, %v2605_v62  ;;  %v2643_v19 = vpack.c.bf16 %v2634_v17, %v2634_v17  ;;  %v2694_v31 = vrot.slane %v2687_v23, 7  ;;  %3509 = vmatprep.subr.bf16.mxu0 %v4060_v29  ;;  %v3691_v62 = vld [vmem:[#allocation20 + $0x18] sm:$0xff]   ;;  %v3692_v53 = vld [vmem:[#allocation20 + $0x10] sm:$0xff]   ;;  %v3693_v17 = vld [vmem:[#allocation20 + $0x8] sm:$0xff]  }
 0x934   :  { %v3756_v9 = vpop.eup %3755  ;;  %v2617_v8 = vmul.f32 %v3145_v5, %v2602_v10 }
 0x935   :  { %v2606_v38 = vmul.f32 %v3756_v9, %v4577_v63  ;;  %v2635_v59 = vadd.f32 %v3146_v52, %v2620_v11  ;;  %v2688_v3 = vunpack.c.l.b16 %v2643_v19 }
 0x936   :  { %v2632_v45 = vadd.f32 %v3146_v52, %v2617_v8  ;;  %3510 = vmatpush3.bf16.msra.mxu0 %v3690_v60  ;;  %v3694_v8 = vld [vmem:[#allocation20] sm:$0xff]  }
 0x937   :  { %v2621_v36 = vmul.f32 %v3145_v5, %v2606_v38  ;;  %v2644_v22 = vpack.c.bf16 %v2635_v59, %v2635_v59  ;;  %v2697_v34 = vrot.slane %v2688_v3, 6  ;;  %v3157_v59 = vld [vmem:[%s4704_s17] ss:$0 sm:$0xff]  ;;  %s4005_s17 = scalar_lea.vmem %s3019_s26, 128 }
 0x938   :  { %v3758_v13 = vpop.eup %3757  ;;  %v2641_v18 = vpack.c.bf16 %v2632_v45, %v2632_v45  ;;  %p4006_p4 = scmp.ne.s32.totalorder %s3019_s26, %s4005_s17  ;;  %p4011_p6 = scmp.lt.s32.totalorder %s4005_s17, %s4005_s17 }
 0x939   :  { %v2607_v58 = vmul.f32 %v3758_v13, %v4581_v15  ;;  %v2636_v16 = vadd.f32 %v3146_v52, %v2621_v36  ;;  %v2689_v25 = vunpack.c.l.b16 %v2644_v22  ;;  %v3166_v22 = vld [vmem:[%s4706_s19] ss:$0 sm:$0xff] }
 0x93a   :  { %p4012_p7 = por %p4011_p6, %p4010_p5 }
 0x93b   :  { %v2622_v43 = vmul.f32 %v3145_v5, %v2607_v58  ;;  %v2645_v63 = vpack.c.bf16 %v2636_v16, %v2636_v16  ;;  %v2700_v28 = vrot.slane %v2689_v25, 5 }
 0x93c   :  { %v3760_v7 = vpop.eup %3759  ;;  %p4013_p8 = pnand %p4012_p7, %p4006_p4 }
 0x93d   :  { %v2637_v46 = vadd.f32 %v3146_v52, %v2622_v43  ;;  %v2608_v26 = vmul.f32 %v3760_v7, %v4585_v1  ;;  %v2690_v49 = vunpack.c.l.b16 %v2645_v63  ;;  %v2686_v1 = vunpack.c.l.b16 %v2641_v18 }
 0x93f   :  { %v2646_v24 = vpack.c.bf16 %v2637_v46, %v2637_v46  ;;  %v2623_v2 = vmul.f32 %v3145_v5, %v2608_v26  ;;  %v2703_v39 = vrot.slane %v2690_v49, 4  ;;  %v2696_v41 = vsel %vm2695_vm3, %v2694_v31, %v2686_v1 }
 0x940   :  { %v3762_v30 = vpop.eup %3761  ;;  %v2699_v57 = vsel %vm2698_vm4, %v2697_v34, %v2696_v41 }
 0x941   :  { %v2638_v21 = vadd.f32 %v3146_v52, %v2623_v2  ;;  %v2609_v15 = vmul.f32 %v3762_v30, %v4589_v40  ;;  %v2691_v33 = vunpack.c.l.b16 %v2646_v24  ;;  %v2702_v47 = vsel %vm2701_vm5, %v2700_v28, %v2699_v57 }
 0x942   :  { %v2705_v50 = vsel %vm2704_vm6, %v2703_v39, %v2702_v47 }
 0x943   :  { %v2624_v35 = vmul.f32 %v3145_v5, %v2609_v15  ;;  %v2647_v27 = vpack.c.bf16 %v2638_v21, %v2638_v21  ;;  %v2706_v42 = vrot.slane %v2691_v33, 3  ;;  %v2669_v5 = vpop.permute.xlu0 %2668 }
 0x944   :  { %v2677_v61 = vmul.f32 %v3147_v4, %v2669_v5 }
 0x945   :  { %v2639_v37 = vadd.f32 %v3146_v52, %v2624_v35  ;;  %v2692_v6 = vunpack.c.l.b16 %v2647_v27  ;;  %v2708_v20 = vsel %vm2707_vm7, %v2706_v42, %v2705_v50 }
 0x947   :  { %v2648_v32 = vpack.c.bf16 %v2639_v37, %v2639_v37  ;;  %v2709_v40 = vrot.slane %v2692_v6, 2 }
 0x949   :  { %v2693_v54 = vunpack.c.l.b16 %v2648_v32  ;;  %v2711_v55 = vsel %vm2710_vm8, %v2709_v40, %v2708_v20 }
 0x94b   :  { %v2712_v14 = vrot.slane %v2693_v54, 1 }
 0x94d   :  { %v2714_v56 = vsel %vm2713_vm9, %v2712_v14, %v2711_v55 }
 0x94e   :  { %v2715_v44 = vpack.c.b16 %v2714_v56, %v2714_v56 }
 0x950   :  { %3492 = vmatmul.mubr.bf16.vlgmr.msra.gmra.mxu1 %v2715_v44 }
 0x951   :  { %3523 = vmatprep.mubr.msk.bf16.mxu1 %vm4061_vm0, %v4060_v29  ;;  %3516 = vmatpush3.bf16.msra.mxu1 %v3691_v62 }
 0x952   :  { %3517 = vmatprep.subr.bf16.mxu1 %v4060_v29 }
 0x955   :  { %3518 = vmatpush3.bf16.msra.mxu1 %v3692_v53 }
 0x956   :  { %3519 = vmatprep.subr.bf16.mxu1 %v4060_v29 }
 0x959   :  { %3520 = vmatpush3.bf16.msra.mxu1 %v3693_v17 }
 0x95a   :  { %3521 = vmatprep.subr.bf16.mxu1 %v4060_v29 }
 0x95d   :  { %3522 = vmatpush3.bf16.msra.mxu1 %v3694_v8 }
 0xa10   :  { %v2799_v9 = vpop.f32.mrf.mxu1 }
 0xa11   :  { %v2800_v10 = vadd.f32 %v2799_v9, %v2677_v61 }
 0xa12   :  { %v3493_v11 = vpop.f32.mrf.mxu1 }
 0xa13   :  { %v2812_v38 = vadd.f32 %v3156_v0, %v2800_v10 }
 0xa14   :  { %v2802_v52 = vpop.f32.mrf.mxu1 }
 0xa15   :  { %v2813_v12 = vmax.f32 %v2812_v38, 0.0 }
 0xa16   :  { %v3494_v36 = vpop.f32.mrf.mxu1 }
 0xa17   :  { %v2814_v13 = vpack.c.bf16 %v2813_v12, %v2813_v12 }
 0xa19   :  { %3512 = vmatmul.mubr.bf16.vlgmr.msra.gmra.mxu0 %v2814_v13 }
 0xad9   :  { %v2920_v58 = vpop.f32.mrf.mxu0 }
 0xada   :  { %v2921_v16 = vadd.f32 %v3157_v59, %v2920_v58 }
 0xadb   :  { %v3513_v51 = vpop.f32.mrf.mxu0 }
 0xadc   :  { %v2926_v43 = vmax.f32 %v2921_v16, 0.0 }
 0xadd   :  { %v2923_v7 = vpop.f32.mrf.mxu0 }
 0xade   :  { %v2927_v19 = vpack.c.bf16 %v2926_v43, %v2926_v43 }
 0xadf   :  { %v3514_v45 = vpop.f32.mrf.mxu0 }
 0xae0   :  { %3524 = vmatmul.mubr.msk.bf16.vlgmr.msra.gmra.mxu1 %vm2967_vm10, %v2927_v19 }
 0xba0   :  { %v3005_v29 = vpop.f32.mrf.mxu1 }
 0xba1   :  { %v3006_v46 = vadd.f32 %v3166_v22, %v3005_v29 }
 0xba2   :  { %v3525_v26 = vpop.f32.mrf.mxu1 }
 0xba3   :  { %3011 = vst [vmem:[#allocation22] sm:$0xff] %v3006_v46 }
 0xba4   :  { %v3008_v63 = vpop.f32.mrf.mxu1 }
 0xba5   :  { %4016 = shalt.err (!%p4013_p8)
}
 0xba6   :  { %3021 = dma.vmem_to_hbm [thread:$0]  %s3019_s26, 128, %s4707_s20, [#allocation4]   ;;  %v3526_v23 = vpop.f32.mrf.mxu1 }
 0xba7   :  { %4039 = dma.done.wait [#allocation4], 128  }
 0xba8   :  { %4040 = vsyncadd [#allocation4], 4294967168 }
 0xba9   :  { %3025 = vsyncpa [#allocation3], 1 }
 0xbaa   :  { %3026 = vsyncpa [#allocation6], 1 }
 0xbab   :  { %3027 = vsyncpa [#allocation9], 1 }
 0xbac   :  { %3028 = vsyncpa [#allocation12], 1 }
 0xbad   :  { %3029 = vsyncpa [#allocation15], 1 }
 0xbae   :  { %3030 = vsyncpa [#allocation18], 1 }
 0xbaf   :  { %3031 = vsyncpa [#allocation21], 1 }
 0xbb0   :  { %3032 = vsyncpa [#allocation4], 1 }

</bundles_post_ra>
